<compile_context>
chip_gen: v6e
topology: v6e:2x2x1
jax: 0.10.0
libtpu: 0.0.40
codegen_flags: <defaults>
</compile_context>

<pallas_src>
import jax
import jax.numpy as jnp
from jax.experimental import pallas as pl
from jax.experimental.pallas import tpu as pltpu


def bigru_kernel(x_ref, h0_ref, wih_ref, bih_ref, whh_ref, bhn_ref, out_ref):
    """One batch block: full bidirectional GRU over all T timesteps.

    x_ref   : (T, TB, I)   resident input block (time-major)
    h0_ref  : (TB, 2H)     [h0_fwd | h0_bwd]
    wih_ref : (I, 6H)      [Wih_f | Wih_b]            (gate order r,z,n)
    bih_ref : (1, 6H)      b_ih + (r,z part of b_hh)  pre-folded
    whh_ref : (2H, 6H)     blockdiag(Whh_f, Whh_b)
    bhn_ref : (1, 6H)      zeros except b_hn_f / b_hn_b in the n slots
    out_ref : (T, TB, 2H)  resident output block (written back once)
    """
    T, TB, I = x_ref.shape
    H = out_ref.shape[-1] // 2

    # Lane-dense input projection for both directions in one MXU pass.
    x_flat = x_ref[...].reshape(T * TB, I)
    gi = jnp.dot(x_flat, wih_ref[...],
                 preferred_element_type=jnp.float32) + bih_ref[...]
    gi = gi.reshape(T, TB, 6 * H)

    whh = whh_ref[...]
    bhn = bhn_ref[...]
    h = h0_ref[...]                       # (TB, 2H) = [h_f | h_b]

    # T is small and static -> fully unrolled loop (lets the scheduler
    # interleave the independent fwd/bwd elementwise work of each step).
    for t in range(T):
        tb = T - 1 - t
        # Single fused recurrent matmul for both directions.
        gh = jnp.dot(h, whh, preferred_element_type=jnp.float32) + bhn  # (TB, 6H)

        gi_f = gi[t]      # forward reads x[t]        -> columns [0:3H]
        gi_b = gi[tb]     # backward reads x[T-1-t]   -> columns [3H:6H]

        r_f = jax.nn.sigmoid(gi_f[:, 0:H] + gh[:, 0:H])
        z_f = jax.nn.sigmoid(gi_f[:, H:2 * H] + gh[:, H:2 * H])
        n_f = jnp.tanh(gi_f[:, 2 * H:3 * H] + r_f * gh[:, 2 * H:3 * H])

        r_b = jax.nn.sigmoid(gi_b[:, 3 * H:4 * H] + gh[:, 3 * H:4 * H])
        z_b = jax.nn.sigmoid(gi_b[:, 4 * H:5 * H] + gh[:, 4 * H:5 * H])
        n_b = jnp.tanh(gi_b[:, 5 * H:6 * H] + r_b * gh[:, 5 * H:6 * H])

        h_f = (1.0 - z_f) * n_f + z_f * h[:, 0:H]
        h_b = (1.0 - z_b) * n_b + z_b * h[:, H:2 * H]
        h = jnp.concatenate([h_f, h_b], axis=-1)

        # VMEM-resident output; forward hidden at time t, backward at T-1-t.
        out_ref[t, :, 0:H] = h_f
        out_ref[tb, :, H:2 * H] = h_b


def communication_channel_forward(inputs, init_hidden, params, *, batch_tile=None):
    """inputs: (B, T, actor_hidden), init_hidden: (2, B, hidden).
    Returns (output (B, T, 2*hidden), h_n (2, B, hidden)) like nn.GRU."""
    B, T, I = inputs.shape
    (wih_f, whh_f, bih_f, bhh_f, wih_b, whh_b, bih_b, bhh_b) = params
    H = whh_f.shape[0]

    # One-time layout change to time-major.
    x_tbi = jnp.transpose(inputs, (1, 0, 2)).astype(jnp.float32)          # (T, B, I)
    h0_cat = jnp.concatenate([init_hidden[0], init_hidden[1]],
                             axis=-1).astype(jnp.float32)                  # (B, 2H)

    # One-time weight/bias prep (fused under jit).
    wih_cat = jnp.concatenate([wih_f, wih_b], axis=1)                      # (I, 6H)
    z_h3h = jnp.zeros((H, 3 * H), jnp.float32)
    whh_bd = jnp.concatenate(
        [jnp.concatenate([whh_f, z_h3h], axis=1),
         jnp.concatenate([z_h3h, whh_b], axis=1)], axis=0)                 # (2H, 6H)
    # Fold b_ih (all gates) + b_hh (r,z gates) into the input-projection bias.
    bih_fold = jnp.concatenate(
        [bih_f[:, :2 * H] + bhh_f[:, :2 * H], bih_f[:, 2 * H:],
         bih_b[:, :2 * H] + bhh_b[:, :2 * H], bih_b[:, 2 * H:]], axis=1)   # (1, 6H)
    z_h = jnp.zeros((1, H), jnp.float32)
    bhn = jnp.concatenate([z_h, z_h, bhh_f[:, 2 * H:],
                           z_h, z_h, bhh_b[:, 2 * H:]], axis=1)            # (1, 6H)

    # Batch tiling: full batch for small B, otherwise multiple-of-8 tiles.
    if batch_tile is None:
        batch_tile = B if B <= 512 else 512
    TB = batch_tile
    assert B % TB == 0 and (TB == B or TB % 8 == 0), \
        "batch tile must divide B and (if < B) be a multiple of 8"
    nb = B // TB

    in_specs = [
        pl.BlockSpec((T, TB, I), lambda b: (0, b, 0)),      # x (resident per block)
        pl.BlockSpec((TB, 2 * H), lambda b: (b, 0)),        # h0
        pl.BlockSpec((I, 6 * H), lambda b: (0, 0)),         # wih (resident)
        pl.BlockSpec((1, 6 * H), lambda b: (0, 0)),         # folded input bias
        pl.BlockSpec((2 * H, 6 * H), lambda b: (0, 0)),     # block-diag whh
        pl.BlockSpec((1, 6 * H), lambda b: (0, 0)),         # b_hn
    ]
    out_spec = pl.BlockSpec((T, TB, 2 * H), lambda b: (0, b, 0))

    out = pl.pallas_call(
        bigru_kernel,
        grid=(nb,),
        in_specs=in_specs,
        out_specs=out_spec,
        out_shape=jax.ShapeDtypeStruct((T, B, 2 * H), jnp.float32),
        compiler_params=pltpu.CompilerParams(
            dimension_semantics=("parallel",)),
    )(x_tbi, h0_cat, wih_cat, bih_fold, whh_bd, bhn)

    output = jnp.transpose(out, (1, 0, 2))                      # (B, T, 2H)
    h_n = jnp.stack([out[T - 1, :, :H], out[0, :, H:]], axis=0)  # (2, B, H)
    return output, h_n


def init_params(key, actor_hidden_size, hidden_size):
    """PyTorch-style GRU init: U(-1/sqrt(H), 1/sqrt(H)); weights stored [in, 3H]."""
    I, H = actor_hidden_size, hidden_size
    bound = 1.0 / float(jnp.sqrt(jnp.float32(H)))
    ks = jax.random.split(key, 8)

    def u(k, shape):
        return jax.random.uniform(k, shape, jnp.float32, -bound, bound)

    wih_f, whh_f = u(ks[0], (I, 3 * H)), u(ks[1], (H, 3 * H))
    bih_f, bhh_f = u(ks[2], (1, 3 * H)), u(ks[3], (1, 3 * H))
    wih_b, whh_b = u(ks[4], (I, 3 * H)), u(ks[5], (H, 3 * H))
    bih_b, bhh_b = u(ks[6], (1, 3 * H)), u(ks[7], (1, 3 * H))
    return (wih_f, whh_f, bih_f, bhh_f, wih_b, whh_b, bih_b, bhh_b)


def bigru_reference(inputs, init_hidden, params):
    """Pure-JAX reference of torch.nn.GRU(bidirectional, batch_first) forward."""
    (wih_f, whh_f, bih_f, bhh_f, wih_b, whh_b, bih_b, bhh_b) = params
    H = whh_f.shape[0]
    x_tbi = jnp.transpose(inputs, (1, 0, 2)).astype(jnp.float32)

    def run(x_seq, h0, wih, whh, bih, bhh):
        def step(h, x):
            gi = x @ wih + bih
            gh = h @ whh + bhh
            i_r, i_z, i_n = gi[:, :H], gi[:, H:2 * H], gi[:, 2 * H:]
            h_r, h_z, h_n = gh[:, :H], gh[:, H:2 * H], gh[:, 2 * H:]
            r = jax.nn.sigmoid(i_r + h_r)
            z = jax.nn.sigmoid(i_z + h_z)
            n = jnp.tanh(i_n + r * h_n)
            h_new = (1.0 - z) * n + z * h
            return h_new, h_new
        h_last, ys = jax.lax.scan(step, h0, x_seq)
        return ys, h_last

    ys_f, h_f = run(x_tbi, init_hidden[0], wih_f, whh_f, bih_f, bhh_f)
    ys_b_rev, h_b = run(x_tbi[::-1], init_hidden[1], wih_b, whh_b, bih_b, bhh_b)
    ys_b = ys_b_rev[::-1]
    output = jnp.concatenate([ys_f, ys_b], axis=-1).transpose(1, 0, 2)
    h_n = jnp.stack([h_f, h_b], axis=0)
    return output, h_n


if __name__ == "__main__":
    # Small shapes consistent with the module:
    #   batch=2, seq_len=8, actor_hidden_size=16, hidden_size=32
    B, T, ACTOR_H, HIDDEN = 2, 8, 16, 32

    key = jax.random.PRNGKey(0)
    k_x, k_h, k_p = jax.random.split(key, 3)

    inputs = jax.random.normal(k_x, (B, T, ACTOR_H), jnp.float32)
    init_hidden = jax.random.normal(k_h, (2, B, HIDDEN), jnp.float32)
    params = init_params(k_p, ACTOR_H, HIDDEN)

    fwd = jax.jit(communication_channel_forward)
    out, h_n = fwd(inputs, init_hidden, params)
    out = jax.block_until_ready(out)
    h_n = jax.block_until_ready(h_n)

    out_ref, h_n_ref = bigru_reference(inputs, init_hidden, params)
    assert out.shape == (B, T, 2 * HIDDEN)
    assert h_n.shape == (2, B, HIDDEN)
    assert jnp.allclose(out, out_ref, atol=1e-4, rtol=1e-4)
    assert jnp.allclose(h_n, h_n_ref, atol=1e-4, rtol=1e-4)

    print("KERNEL_OK")
</pallas_src>

<mosaic_0001>
module attributes {stable_mosaic.version = 11 : i64} {
  func.func @bigru_kernel(%arg0: i32, %arg1: memref<8x2x16xf32, #tpu.memory_space<vmem>>, %arg2: memref<2x64xf32, #tpu.memory_space<vmem>>, %arg3: memref<16x192xf32, #tpu.memory_space<vmem>>, %arg4: memref<1x192xf32, #tpu.memory_space<vmem>>, %arg5: memref<64x192xf32, #tpu.memory_space<vmem>>, %arg6: memref<1x192xf32, #tpu.memory_space<vmem>>, %arg7: memref<8x2x64xf32, #tpu.memory_space<vmem>>) attributes {dimension_semantics = [#tpu.dimension_semantics<parallel>], iteration_bounds = array<i64: 1>, scalar_prefetch = 0 : i64, scratch_operands = 0 : i64, tpu.core_type = #tpu.core_type<tc>, window_params = [{transform_indices = @transform_0, window_bounds = array<i64: 8, 2, 16>}, {transform_indices = @transform_1, window_bounds = array<i64: 2, 64>}, {pipeline_mode = #tpu.pipeline_mode<synchronous>, transform_indices = @transform_2, window_bounds = array<i64: 16, 192>}, {pipeline_mode = #tpu.pipeline_mode<synchronous>, transform_indices = @transform_3, window_bounds = array<i64: 1, 192>}, {pipeline_mode = #tpu.pipeline_mode<synchronous>, transform_indices = @transform_4, window_bounds = array<i64: 64, 192>}, {pipeline_mode = #tpu.pipeline_mode<synchronous>, transform_indices = @transform_5, window_bounds = array<i64: 1, 192>}, {transform_indices = @transform_6, window_bounds = array<i64: 8, 2, 64>}]} {
    %c0 = arith.constant 0 : index
    %c0_0 = arith.constant 0 : index
    %c0_1 = arith.constant 0 : index
    %0 = vector.load %arg1[%c0, %c0_0, %c0_1] : memref<8x2x16xf32, #tpu.memory_space<vmem>>, vector<8x2x16xf32>
    %1 = vector.shape_cast %0 : vector<8x2x16xf32> to vector<16x16xf32>
    %c0_2 = arith.constant 0 : index
    %c0_3 = arith.constant 0 : index
    %2 = vector.load %arg3[%c0_2, %c0_3] : memref<16x192xf32, #tpu.memory_space<vmem>>, vector<16x192xf32>
    %cst = arith.constant dense<0.000000e+00> : vector<16x192xf32>
    %3 = tpu.matmul %1, %2, %cst {dimension_numbers = #tpu.dot_dimension_numbers<[1], [0], [0], [1], [0, 0, 1, 1], [], []>} : vector<16x16xf32>, vector<16x192xf32>, vector<16x192xf32> -> vector<16x192xf32>
    %c0_4 = arith.constant 0 : index
    %c0_5 = arith.constant 0 : index
    %4 = vector.load %arg4[%c0_4, %c0_5] : memref<1x192xf32, #tpu.memory_space<vmem>>, vector<1x192xf32>
    %5 = vector.broadcast %4 : vector<1x192xf32> to vector<16x192xf32>
    %6 = arith.addf %3, %5 : vector<16x192xf32>
    %7 = vector.shape_cast %6 : vector<16x192xf32> to vector<8x2x192xf32>
    %c0_6 = arith.constant 0 : index
    %c0_7 = arith.constant 0 : index
    %8 = vector.load %arg5[%c0_6, %c0_7] : memref<64x192xf32, #tpu.memory_space<vmem>>, vector<64x192xf32>
    %c0_8 = arith.constant 0 : index
    %c0_9 = arith.constant 0 : index
    %9 = vector.load %arg6[%c0_8, %c0_9] : memref<1x192xf32, #tpu.memory_space<vmem>>, vector<1x192xf32>
    %c0_10 = arith.constant 0 : index
    %c0_11 = arith.constant 0 : index
    %10 = vector.load %arg2[%c0_10, %c0_11] : memref<2x64xf32, #tpu.memory_space<vmem>>, vector<2x64xf32>
    %cst_12 = arith.constant dense<0.000000e+00> : vector<2x192xf32>
    %11 = tpu.matmul %10, %8, %cst_12 {dimension_numbers = #tpu.dot_dimension_numbers<[1], [0], [0], [1], [0, 0, 1, 1], [], []>} : vector<2x64xf32>, vector<64x192xf32>, vector<2x192xf32> -> vector<2x192xf32>
    %12 = vector.broadcast %9 : vector<1x192xf32> to vector<2x192xf32>
    %13 = arith.addf %11, %12 : vector<2x192xf32>
    %14 = vector.extract_strided_slice %7 {offsets = [0, 0, 0], sizes = [1, 2, 192], strides = [1, 1, 1]} : vector<8x2x192xf32> to vector<1x2x192xf32>
    %15 = vector.shape_cast %14 : vector<1x2x192xf32> to vector<2x192xf32>
    %16 = vector.extract_strided_slice %7 {offsets = [7, 0, 0], sizes = [1, 2, 192], strides = [1, 1, 1]} : vector<8x2x192xf32> to vector<1x2x192xf32>
    %17 = vector.shape_cast %16 : vector<1x2x192xf32> to vector<2x192xf32>
    %18 = vector.extract_strided_slice %15 {offsets = [0, 0], sizes = [2, 32], strides = [1, 1]} : vector<2x192xf32> to vector<2x32xf32>
    %19 = vector.extract_strided_slice %13 {offsets = [0, 0], sizes = [2, 32], strides = [1, 1]} : vector<2x192xf32> to vector<2x32xf32>
    %20 = arith.addf %18, %19 : vector<2x32xf32>
    %21 = arith.negf %20 : vector<2x32xf32>
    %22 = math.exp %21 : vector<2x32xf32>
    %cst_13 = arith.constant 1.000000e+00 : f32
    %23 = vector.broadcast %cst_13 : f32 to vector<2x32xf32>
    %24 = arith.addf %23, %22 : vector<2x32xf32>
    %25 = arith.divf %23, %24 : vector<2x32xf32>
    %26 = vector.extract_strided_slice %15 {offsets = [0, 32], sizes = [2, 32], strides = [1, 1]} : vector<2x192xf32> to vector<2x32xf32>
    %27 = vector.extract_strided_slice %13 {offsets = [0, 32], sizes = [2, 32], strides = [1, 1]} : vector<2x192xf32> to vector<2x32xf32>
    %28 = arith.addf %26, %27 : vector<2x32xf32>
    %29 = arith.negf %28 : vector<2x32xf32>
    %30 = math.exp %29 : vector<2x32xf32>
    %cst_14 = arith.constant 1.000000e+00 : f32
    %31 = vector.broadcast %cst_14 : f32 to vector<2x32xf32>
    %32 = arith.addf %31, %30 : vector<2x32xf32>
    %33 = arith.divf %31, %32 : vector<2x32xf32>
    %34 = vector.extract_strided_slice %15 {offsets = [0, 64], sizes = [2, 32], strides = [1, 1]} : vector<2x192xf32> to vector<2x32xf32>
    %35 = vector.extract_strided_slice %13 {offsets = [0, 64], sizes = [2, 32], strides = [1, 1]} : vector<2x192xf32> to vector<2x32xf32>
    %36 = arith.mulf %25, %35 : vector<2x32xf32>
    %37 = arith.addf %34, %36 : vector<2x32xf32>
    %38 = math.tanh %37 : vector<2x32xf32>
    %39 = vector.extract_strided_slice %17 {offsets = [0, 96], sizes = [2, 32], strides = [1, 1]} : vector<2x192xf32> to vector<2x32xf32>
    %40 = vector.extract_strided_slice %13 {offsets = [0, 96], sizes = [2, 32], strides = [1, 1]} : vector<2x192xf32> to vector<2x32xf32>
    %41 = arith.addf %39, %40 : vector<2x32xf32>
    %42 = arith.negf %41 : vector<2x32xf32>
    %43 = math.exp %42 : vector<2x32xf32>
    %cst_15 = arith.constant 1.000000e+00 : f32
    %44 = vector.broadcast %cst_15 : f32 to vector<2x32xf32>
    %45 = arith.addf %44, %43 : vector<2x32xf32>
    %46 = arith.divf %44, %45 : vector<2x32xf32>
    %47 = vector.extract_strided_slice %17 {offsets = [0, 128], sizes = [2, 32], strides = [1, 1]} : vector<2x192xf32> to vector<2x32xf32>
    %48 = vector.extract_strided_slice %13 {offsets = [0, 128], sizes = [2, 32], strides = [1, 1]} : vector<2x192xf32> to vector<2x32xf32>
    %49 = arith.addf %47, %48 : vector<2x32xf32>
    %50 = arith.negf %49 : vector<2x32xf32>
    %51 = math.exp %50 : vector<2x32xf32>
    %cst_16 = arith.constant 1.000000e+00 : f32
    %52 = vector.broadcast %cst_16 : f32 to vector<2x32xf32>
    %53 = arith.addf %52, %51 : vector<2x32xf32>
    %54 = arith.divf %52, %53 : vector<2x32xf32>
    %55 = vector.extract_strided_slice %17 {offsets = [0, 160], sizes = [2, 32], strides = [1, 1]} : vector<2x192xf32> to vector<2x32xf32>
    %56 = vector.extract_strided_slice %13 {offsets = [0, 160], sizes = [2, 32], strides = [1, 1]} : vector<2x192xf32> to vector<2x32xf32>
    %57 = arith.mulf %46, %56 : vector<2x32xf32>
    %58 = arith.addf %55, %57 : vector<2x32xf32>
    %59 = math.tanh %58 : vector<2x32xf32>
    %cst_17 = arith.constant 1.000000e+00 : f32
    %60 = vector.broadcast %cst_17 : f32 to vector<2x32xf32>
    %61 = arith.subf %60, %33 : vector<2x32xf32>
    %62 = arith.mulf %61, %38 : vector<2x32xf32>
    %63 = vector.extract_strided_slice %10 {offsets = [0, 0], sizes = [2, 32], strides = [1, 1]} : vector<2x64xf32> to vector<2x32xf32>
    %64 = arith.mulf %33, %63 : vector<2x32xf32>
    %65 = arith.addf %62, %64 : vector<2x32xf32>
    %cst_18 = arith.constant 1.000000e+00 : f32
    %66 = vector.broadcast %cst_18 : f32 to vector<2x32xf32>
    %67 = arith.subf %66, %54 : vector<2x32xf32>
    %68 = arith.mulf %67, %59 : vector<2x32xf32>
    %69 = vector.extract_strided_slice %10 {offsets = [0, 32], sizes = [2, 32], strides = [1, 1]} : vector<2x64xf32> to vector<2x32xf32>
    %70 = arith.mulf %54, %69 : vector<2x32xf32>
    %71 = arith.addf %68, %70 : vector<2x32xf32>
    %72 = tpu.concatenate %65, %71 in 1 : vector<2x32xf32>, vector<2x32xf32> -> vector<2x64xf32>
    %c0_19 = arith.constant 0 : index
    %c0_20 = arith.constant 0 : index
    %c0_21 = arith.constant 0 : index
    %73 = vector.load %arg7[%c0_19, %c0_20, %c0_21] : memref<8x2x64xf32, #tpu.memory_space<vmem>>, vector<1x2x32xf32>
    %74 = vector.shape_cast %73 : vector<1x2x32xf32> to vector<2x32xf32>
    %75 = vector.shape_cast %65 : vector<2x32xf32> to vector<1x2x32xf32>
    tpu.vector_store %arg7[%c0_19, %c0_20, %c0_21], %75 {strides = array<i32>} : memref<8x2x64xf32, #tpu.memory_space<vmem>>, vector<1x2x32xf32>,
    %c7 = arith.constant 7 : index
    %c0_22 = arith.constant 0 : index
    %c32 = arith.constant 32 : index
    %76 = vector.load %arg7[%c7, %c0_22, %c32] : memref<8x2x64xf32, #tpu.memory_space<vmem>>, vector<1x2x32xf32>
    %77 = vector.shape_cast %76 : vector<1x2x32xf32> to vector<2x32xf32>
    %78 = vector.shape_cast %71 : vector<2x32xf32> to vector<1x2x32xf32>
    tpu.vector_store %arg7[%c7, %c0_22, %c32], %78 {strides = array<i32>} : memref<8x2x64xf32, #tpu.memory_space<vmem>>, vector<1x2x32xf32>,
    %cst_23 = arith.constant dense<0.000000e+00> : vector<2x192xf32>
    %79 = tpu.matmul %72, %8, %cst_23 {dimension_numbers = #tpu.dot_dimension_numbers<[1], [0], [0], [1], [0, 0, 1, 1], [], []>} : vector<2x64xf32>, vector<64x192xf32>, vector<2x192xf32> -> vector<2x192xf32>
    %80 = vector.broadcast %9 : vector<1x192xf32> to vector<2x192xf32>
    %81 = arith.addf %79, %80 : vector<2x192xf32>
    %82 = vector.extract_strided_slice %7 {offsets = [1, 0, 0], sizes = [1, 2, 192], strides = [1, 1, 1]} : vector<8x2x192xf32> to vector<1x2x192xf32>
    %83 = vector.shape_cast %82 : vector<1x2x192xf32> to vector<2x192xf32>
    %84 = vector.extract_strided_slice %7 {offsets = [6, 0, 0], sizes = [1, 2, 192], strides = [1, 1, 1]} : vector<8x2x192xf32> to vector<1x2x192xf32>
    %85 = vector.shape_cast %84 : vector<1x2x192xf32> to vector<2x192xf32>
    %86 = vector.extract_strided_slice %83 {offsets = [0, 0], sizes = [2, 32], strides = [1, 1]} : vector<2x192xf32> to vector<2x32xf32>
    %87 = vector.extract_strided_slice %81 {offsets = [0, 0], sizes = [2, 32], strides = [1, 1]} : vector<2x192xf32> to vector<2x32xf32>
    %88 = arith.addf %86, %87 : vector<2x32xf32>
    %89 = arith.negf %88 : vector<2x32xf32>
    %90 = math.exp %89 : vector<2x32xf32>
    %cst_24 = arith.constant 1.000000e+00 : f32
    %91 = vector.broadcast %cst_24 : f32 to vector<2x32xf32>
    %92 = arith.addf %91, %90 : vector<2x32xf32>
    %93 = arith.divf %91, %92 : vector<2x32xf32>
    %94 = vector.extract_strided_slice %83 {offsets = [0, 32], sizes = [2, 32], strides = [1, 1]} : vector<2x192xf32> to vector<2x32xf32>
    %95 = vector.extract_strided_slice %81 {offsets = [0, 32], sizes = [2, 32], strides = [1, 1]} : vector<2x192xf32> to vector<2x32xf32>
    %96 = arith.addf %94, %95 : vector<2x32xf32>
    %97 = arith.negf %96 : vector<2x32xf32>
    %98 = math.exp %97 : vector<2x32xf32>
    %cst_25 = arith.constant 1.000000e+00 : f32
    %99 = vector.broadcast %cst_25 : f32 to vector<2x32xf32>
    %100 = arith.addf %99, %98 : vector<2x32xf32>
    %101 = arith.divf %99, %100 : vector<2x32xf32>
    %102 = vector.extract_strided_slice %83 {offsets = [0, 64], sizes = [2, 32], strides = [1, 1]} : vector<2x192xf32> to vector<2x32xf32>
    %103 = vector.extract_strided_slice %81 {offsets = [0, 64], sizes = [2, 32], strides = [1, 1]} : vector<2x192xf32> to vector<2x32xf32>
    %104 = arith.mulf %93, %103 : vector<2x32xf32>
    %105 = arith.addf %102, %104 : vector<2x32xf32>
    %106 = math.tanh %105 : vector<2x32xf32>
    %107 = vector.extract_strided_slice %85 {offsets = [0, 96], sizes = [2, 32], strides = [1, 1]} : vector<2x192xf32> to vector<2x32xf32>
    %108 = vector.extract_strided_slice %81 {offsets = [0, 96], sizes = [2, 32], strides = [1, 1]} : vector<2x192xf32> to vector<2x32xf32>
    %109 = arith.addf %107, %108 : vector<2x32xf32>
    %110 = arith.negf %109 : vector<2x32xf32>
    %111 = math.exp %110 : vector<2x32xf32>
    %cst_26 = arith.constant 1.000000e+00 : f32
    %112 = vector.broadcast %cst_26 : f32 to vector<2x32xf32>
    %113 = arith.addf %112, %111 : vector<2x32xf32>
    %114 = arith.divf %112, %113 : vector<2x32xf32>
    %115 = vector.extract_strided_slice %85 {offsets = [0, 128], sizes = [2, 32], strides = [1, 1]} : vector<2x192xf32> to vector<2x32xf32>
    %116 = vector.extract_strided_slice %81 {offsets = [0, 128], sizes = [2, 32], strides = [1, 1]} : vector<2x192xf32> to vector<2x32xf32>
    %117 = arith.addf %115, %116 : vector<2x32xf32>
    %118 = arith.negf %117 : vector<2x32xf32>
    %119 = math.exp %118 : vector<2x32xf32>
    %cst_27 = arith.constant 1.000000e+00 : f32
    %120 = vector.broadcast %cst_27 : f32 to vector<2x32xf32>
    %121 = arith.addf %120, %119 : vector<2x32xf32>
    %122 = arith.divf %120, %121 : vector<2x32xf32>
    %123 = vector.extract_strided_slice %85 {offsets = [0, 160], sizes = [2, 32], strides = [1, 1]} : vector<2x192xf32> to vector<2x32xf32>
    %124 = vector.extract_strided_slice %81 {offsets = [0, 160], sizes = [2, 32], strides = [1, 1]} : vector<2x192xf32> to vector<2x32xf32>
    %125 = arith.mulf %114, %124 : vector<2x32xf32>
    %126 = arith.addf %123, %125 : vector<2x32xf32>
    %127 = math.tanh %126 : vector<2x32xf32>
    %cst_28 = arith.constant 1.000000e+00 : f32
    %128 = vector.broadcast %cst_28 : f32 to vector<2x32xf32>
    %129 = arith.subf %128, %101 : vector<2x32xf32>
    %130 = arith.mulf %129, %106 : vector<2x32xf32>
    %131 = vector.extract_strided_slice %72 {offsets = [0, 0], sizes = [2, 32], strides = [1, 1]} : vector<2x64xf32> to vector<2x32xf32>
    %132 = arith.mulf %101, %131 : vector<2x32xf32>
    %133 = arith.addf %130, %132 : vector<2x32xf32>
    %cst_29 = arith.constant 1.000000e+00 : f32
    %134 = vector.broadcast %cst_29 : f32 to vector<2x32xf32>
    %135 = arith.subf %134, %122 : vector<2x32xf32>
    %136 = arith.mulf %135, %127 : vector<2x32xf32>
    %137 = vector.extract_strided_slice %72 {offsets = [0, 32], sizes = [2, 32], strides = [1, 1]} : vector<2x64xf32> to vector<2x32xf32>
    %138 = arith.mulf %122, %137 : vector<2x32xf32>
    %139 = arith.addf %136, %138 : vector<2x32xf32>
    %140 = tpu.concatenate %133, %139 in 1 : vector<2x32xf32>, vector<2x32xf32> -> vector<2x64xf32>
    %c1 = arith.constant 1 : index
    %c0_30 = arith.constant 0 : index
    %c0_31 = arith.constant 0 : index
    %141 = vector.load %arg7[%c1, %c0_30, %c0_31] : memref<8x2x64xf32, #tpu.memory_space<vmem>>, vector<1x2x32xf32>
    %142 = vector.shape_cast %141 : vector<1x2x32xf32> to vector<2x32xf32>
    %143 = vector.shape_cast %133 : vector<2x32xf32> to vector<1x2x32xf32>
    tpu.vector_store %arg7[%c1, %c0_30, %c0_31], %143 {strides = array<i32>} : memref<8x2x64xf32, #tpu.memory_space<vmem>>, vector<1x2x32xf32>,
    %c6 = arith.constant 6 : index
    %c0_32 = arith.constant 0 : index
    %c32_33 = arith.constant 32 : index
    %144 = vector.load %arg7[%c6, %c0_32, %c32_33] : memref<8x2x64xf32, #tpu.memory_space<vmem>>, vector<1x2x32xf32>
    %145 = vector.shape_cast %144 : vector<1x2x32xf32> to vector<2x32xf32>
    %146 = vector.shape_cast %139 : vector<2x32xf32> to vector<1x2x32xf32>
    tpu.vector_store %arg7[%c6, %c0_32, %c32_33], %146 {strides = array<i32>} : memref<8x2x64xf32, #tpu.memory_space<vmem>>, vector<1x2x32xf32>,
    %cst_34 = arith.constant dense<0.000000e+00> : vector<2x192xf32>
    %147 = tpu.matmul %140, %8, %cst_34 {dimension_numbers = #tpu.dot_dimension_numbers<[1], [0], [0], [1], [0, 0, 1, 1], [], []>} : vector<2x64xf32>, vector<64x192xf32>, vector<2x192xf32> -> vector<2x192xf32>
    %148 = vector.broadcast %9 : vector<1x192xf32> to vector<2x192xf32>
    %149 = arith.addf %147, %148 : vector<2x192xf32>
    %150 = vector.extract_strided_slice %7 {offsets = [2, 0, 0], sizes = [1, 2, 192], strides = [1, 1, 1]} : vector<8x2x192xf32> to vector<1x2x192xf32>
    %151 = vector.shape_cast %150 : vector<1x2x192xf32> to vector<2x192xf32>
    %152 = vector.extract_strided_slice %7 {offsets = [5, 0, 0], sizes = [1, 2, 192], strides = [1, 1, 1]} : vector<8x2x192xf32> to vector<1x2x192xf32>
    %153 = vector.shape_cast %152 : vector<1x2x192xf32> to vector<2x192xf32>
    %154 = vector.extract_strided_slice %151 {offsets = [0, 0], sizes = [2, 32], strides = [1, 1]} : vector<2x192xf32> to vector<2x32xf32>
    %155 = vector.extract_strided_slice %149 {offsets = [0, 0], sizes = [2, 32], strides = [1, 1]} : vector<2x192xf32> to vector<2x32xf32>
    %156 = arith.addf %154, %155 : vector<2x32xf32>
    %157 = arith.negf %156 : vector<2x32xf32>
    %158 = math.exp %157 : vector<2x32xf32>
    %cst_35 = arith.constant 1.000000e+00 : f32
    %159 = vector.broadcast %cst_35 : f32 to vector<2x32xf32>
    %160 = arith.addf %159, %158 : vector<2x32xf32>
    %161 = arith.divf %159, %160 : vector<2x32xf32>
    %162 = vector.extract_strided_slice %151 {offsets = [0, 32], sizes = [2, 32], strides = [1, 1]} : vector<2x192xf32> to vector<2x32xf32>
    %163 = vector.extract_strided_slice %149 {offsets = [0, 32], sizes = [2, 32], strides = [1, 1]} : vector<2x192xf32> to vector<2x32xf32>
    %164 = arith.addf %162, %163 : vector<2x32xf32>
    %165 = arith.negf %164 : vector<2x32xf32>
    %166 = math.exp %165 : vector<2x32xf32>
    %cst_36 = arith.constant 1.000000e+00 : f32
    %167 = vector.broadcast %cst_36 : f32 to vector<2x32xf32>
    %168 = arith.addf %167, %166 : vector<2x32xf32>
    %169 = arith.divf %167, %168 : vector<2x32xf32>
    %170 = vector.extract_strided_slice %151 {offsets = [0, 64], sizes = [2, 32], strides = [1, 1]} : vector<2x192xf32> to vector<2x32xf32>
    %171 = vector.extract_strided_slice %149 {offsets = [0, 64], sizes = [2, 32], strides = [1, 1]} : vector<2x192xf32> to vector<2x32xf32>
    %172 = arith.mulf %161, %171 : vector<2x32xf32>
    %173 = arith.addf %170, %172 : vector<2x32xf32>
    %174 = math.tanh %173 : vector<2x32xf32>
    %175 = vector.extract_strided_slice %153 {offsets = [0, 96], sizes = [2, 32], strides = [1, 1]} : vector<2x192xf32> to vector<2x32xf32>
    %176 = vector.extract_strided_slice %149 {offsets = [0, 96], sizes = [2, 32], strides = [1, 1]} : vector<2x192xf32> to vector<2x32xf32>
    %177 = arith.addf %175, %176 : vector<2x32xf32>
    %178 = arith.negf %177 : vector<2x32xf32>
    %179 = math.exp %178 : vector<2x32xf32>
    %cst_37 = arith.constant 1.000000e+00 : f32
    %180 = vector.broadcast %cst_37 : f32 to vector<2x32xf32>
    %181 = arith.addf %180, %179 : vector<2x32xf32>
    %182 = arith.divf %180, %181 : vector<2x32xf32>
    %183 = vector.extract_strided_slice %153 {offsets = [0, 128], sizes = [2, 32], strides = [1, 1]} : vector<2x192xf32> to vector<2x32xf32>
    %184 = vector.extract_strided_slice %149 {offsets = [0, 128], sizes = [2, 32], strides = [1, 1]} : vector<2x192xf32> to vector<2x32xf32>
    %185 = arith.addf %183, %184 : vector<2x32xf32>
    %186 = arith.negf %185 : vector<2x32xf32>
    %187 = math.exp %186 : vector<2x32xf32>
    %cst_38 = arith.constant 1.000000e+00 : f32
    %188 = vector.broadcast %cst_38 : f32 to vector<2x32xf32>
    %189 = arith.addf %188, %187 : vector<2x32xf32>
    %190 = arith.divf %188, %189 : vector<2x32xf32>
    %191 = vector.extract_strided_slice %153 {offsets = [0, 160], sizes = [2, 32], strides = [1, 1]} : vector<2x192xf32> to vector<2x32xf32>
    %192 = vector.extract_strided_slice %149 {offsets = [0, 160], sizes = [2, 32], strides = [1, 1]} : vector<2x192xf32> to vector<2x32xf32>
    %193 = arith.mulf %182, %192 : vector<2x32xf32>
    %194 = arith.addf %191, %193 : vector<2x32xf32>
    %195 = math.tanh %194 : vector<2x32xf32>
    %cst_39 = arith.constant 1.000000e+00 : f32
    %196 = vector.broadcast %cst_39 : f32 to vector<2x32xf32>
    %197 = arith.subf %196, %169 : vector<2x32xf32>
    %198 = arith.mulf %197, %174 : vector<2x32xf32>
    %199 = vector.extract_strided_slice %140 {offsets = [0, 0], sizes = [2, 32], strides = [1, 1]} : vector<2x64xf32> to vector<2x32xf32>
    %200 = arith.mulf %169, %199 : vector<2x32xf32>
    %201 = arith.addf %198, %200 : vector<2x32xf32>
    %cst_40 = arith.constant 1.000000e+00 : f32
    %202 = vector.broadcast %cst_40 : f32 to vector<2x32xf32>
    %203 = arith.subf %202, %190 : vector<2x32xf32>
    %204 = arith.mulf %203, %195 : vector<2x32xf32>
    %205 = vector.extract_strided_slice %140 {offsets = [0, 32], sizes = [2, 32], strides = [1, 1]} : vector<2x64xf32> to vector<2x32xf32>
    %206 = arith.mulf %190, %205 : vector<2x32xf32>
    %207 = arith.addf %204, %206 : vector<2x32xf32>
    %208 = tpu.concatenate %201, %207 in 1 : vector<2x32xf32>, vector<2x32xf32> -> vector<2x64xf32>
    %c2 = arith.constant 2 : index
    %c0_41 = arith.constant 0 : index
    %c0_42 = arith.constant 0 : index
    %209 = vector.load %arg7[%c2, %c0_41, %c0_42] : memref<8x2x64xf32, #tpu.memory_space<vmem>>, vector<1x2x32xf32>
    %210 = vector.shape_cast %209 : vector<1x2x32xf32> to vector<2x32xf32>
    %211 = vector.shape_cast %201 : vector<2x32xf32> to vector<1x2x32xf32>
    tpu.vector_store %arg7[%c2, %c0_41, %c0_42], %211 {strides = array<i32>} : memref<8x2x64xf32, #tpu.memory_space<vmem>>, vector<1x2x32xf32>,
    %c5 = arith.constant 5 : index
    %c0_43 = arith.constant 0 : index
    %c32_44 = arith.constant 32 : index
    %212 = vector.load %arg7[%c5, %c0_43, %c32_44] : memref<8x2x64xf32, #tpu.memory_space<vmem>>, vector<1x2x32xf32>
    %213 = vector.shape_cast %212 : vector<1x2x32xf32> to vector<2x32xf32>
    %214 = vector.shape_cast %207 : vector<2x32xf32> to vector<1x2x32xf32>
    tpu.vector_store %arg7[%c5, %c0_43, %c32_44], %214 {strides = array<i32>} : memref<8x2x64xf32, #tpu.memory_space<vmem>>, vector<1x2x32xf32>,
    %cst_45 = arith.constant dense<0.000000e+00> : vector<2x192xf32>
    %215 = tpu.matmul %208, %8, %cst_45 {dimension_numbers = #tpu.dot_dimension_numbers<[1], [0], [0], [1], [0, 0, 1, 1], [], []>} : vector<2x64xf32>, vector<64x192xf32>, vector<2x192xf32> -> vector<2x192xf32>
    %216 = vector.broadcast %9 : vector<1x192xf32> to vector<2x192xf32>
    %217 = arith.addf %215, %216 : vector<2x192xf32>
    %218 = vector.extract_strided_slice %7 {offsets = [3, 0, 0], sizes = [1, 2, 192], strides = [1, 1, 1]} : vector<8x2x192xf32> to vector<1x2x192xf32>
    %219 = vector.shape_cast %218 : vector<1x2x192xf32> to vector<2x192xf32>
    %220 = vector.extract_strided_slice %7 {offsets = [4, 0, 0], sizes = [1, 2, 192], strides = [1, 1, 1]} : vector<8x2x192xf32> to vector<1x2x192xf32>
    %221 = vector.shape_cast %220 : vector<1x2x192xf32> to vector<2x192xf32>
    %222 = vector.extract_strided_slice %219 {offsets = [0, 0], sizes = [2, 32], strides = [1, 1]} : vector<2x192xf32> to vector<2x32xf32>
    %223 = vector.extract_strided_slice %217 {offsets = [0, 0], sizes = [2, 32], strides = [1, 1]} : vector<2x192xf32> to vector<2x32xf32>
    %224 = arith.addf %222, %223 : vector<2x32xf32>
    %225 = arith.negf %224 : vector<2x32xf32>
    %226 = math.exp %225 : vector<2x32xf32>
    %cst_46 = arith.constant 1.000000e+00 : f32
    %227 = vector.broadcast %cst_46 : f32 to vector<2x32xf32>
    %228 = arith.addf %227, %226 : vector<2x32xf32>
    %229 = arith.divf %227, %228 : vector<2x32xf32>
    %230 = vector.extract_strided_slice %219 {offsets = [0, 32], sizes = [2, 32], strides = [1, 1]} : vector<2x192xf32> to vector<2x32xf32>
    %231 = vector.extract_strided_slice %217 {offsets = [0, 32], sizes = [2, 32], strides = [1, 1]} : vector<2x192xf32> to vector<2x32xf32>
    %232 = arith.addf %230, %231 : vector<2x32xf32>
    %233 = arith.negf %232 : vector<2x32xf32>
    %234 = math.exp %233 : vector<2x32xf32>
    %cst_47 = arith.constant 1.000000e+00 : f32
    %235 = vector.broadcast %cst_47 : f32 to vector<2x32xf32>
    %236 = arith.addf %235, %234 : vector<2x32xf32>
    %237 = arith.divf %235, %236 : vector<2x32xf32>
    %238 = vector.extract_strided_slice %219 {offsets = [0, 64], sizes = [2, 32], strides = [1, 1]} : vector<2x192xf32> to vector<2x32xf32>
    %239 = vector.extract_strided_slice %217 {offsets = [0, 64], sizes = [2, 32], strides = [1, 1]} : vector<2x192xf32> to vector<2x32xf32>
    %240 = arith.mulf %229, %239 : vector<2x32xf32>
    %241 = arith.addf %238, %240 : vector<2x32xf32>
    %242 = math.tanh %241 : vector<2x32xf32>
    %243 = vector.extract_strided_slice %221 {offsets = [0, 96], sizes = [2, 32], strides = [1, 1]} : vector<2x192xf32> to vector<2x32xf32>
    %244 = vector.extract_strided_slice %217 {offsets = [0, 96], sizes = [2, 32], strides = [1, 1]} : vector<2x192xf32> to vector<2x32xf32>
    %245 = arith.addf %243, %244 : vector<2x32xf32>
    %246 = arith.negf %245 : vector<2x32xf32>
    %247 = math.exp %246 : vector<2x32xf32>
    %cst_48 = arith.constant 1.000000e+00 : f32
    %248 = vector.broadcast %cst_48 : f32 to vector<2x32xf32>
    %249 = arith.addf %248, %247 : vector<2x32xf32>
    %250 = arith.divf %248, %249 : vector<2x32xf32>
    %251 = vector.extract_strided_slice %221 {offsets = [0, 128], sizes = [2, 32], strides = [1, 1]} : vector<2x192xf32> to vector<2x32xf32>
    %252 = vector.extract_strided_slice %217 {offsets = [0, 128], sizes = [2, 32], strides = [1, 1]} : vector<2x192xf32> to vector<2x32xf32>
    %253 = arith.addf %251, %252 : vector<2x32xf32>
    %254 = arith.negf %253 : vector<2x32xf32>
    %255 = math.exp %254 : vector<2x32xf32>
    %cst_49 = arith.constant 1.000000e+00 : f32
    %256 = vector.broadcast %cst_49 : f32 to vector<2x32xf32>
    %257 = arith.addf %256, %255 : vector<2x32xf32>
    %258 = arith.divf %256, %257 : vector<2x32xf32>
    %259 = vector.extract_strided_slice %221 {offsets = [0, 160], sizes = [2, 32], strides = [1, 1]} : vector<2x192xf32> to vector<2x32xf32>
    %260 = vector.extract_strided_slice %217 {offsets = [0, 160], sizes = [2, 32], strides = [1, 1]} : vector<2x192xf32> to vector<2x32xf32>
    %261 = arith.mulf %250, %260 : vector<2x32xf32>
    %262 = arith.addf %259, %261 : vector<2x32xf32>
    %263 = math.tanh %262 : vector<2x32xf32>
    %cst_50 = arith.constant 1.000000e+00 : f32
    %264 = vector.broadcast %cst_50 : f32 to vector<2x32xf32>
    %265 = arith.subf %264, %237 : vector<2x32xf32>
    %266 = arith.mulf %265, %242 : vector<2x32xf32>
    %267 = vector.extract_strided_slice %208 {offsets = [0, 0], sizes = [2, 32], strides = [1, 1]} : vector<2x64xf32> to vector<2x32xf32>
    %268 = arith.mulf %237, %267 : vector<2x32xf32>
    %269 = arith.addf %266, %268 : vector<2x32xf32>
    %cst_51 = arith.constant 1.000000e+00 : f32
    %270 = vector.broadcast %cst_51 : f32 to vector<2x32xf32>
    %271 = arith.subf %270, %258 : vector<2x32xf32>
    %272 = arith.mulf %271, %263 : vector<2x32xf32>
    %273 = vector.extract_strided_slice %208 {offsets = [0, 32], sizes = [2, 32], strides = [1, 1]} : vector<2x64xf32> to vector<2x32xf32>
    %274 = arith.mulf %258, %273 : vector<2x32xf32>
    %275 = arith.addf %272, %274 : vector<2x32xf32>
    %276 = tpu.concatenate %269, %275 in 1 : vector<2x32xf32>, vector<2x32xf32> -> vector<2x64xf32>
    %c3 = arith.constant 3 : index
    %c0_52 = arith.constant 0 : index
    %c0_53 = arith.constant 0 : index
    %277 = vector.load %arg7[%c3, %c0_52, %c0_53] : memref<8x2x64xf32, #tpu.memory_space<vmem>>, vector<1x2x32xf32>
    %278 = vector.shape_cast %277 : vector<1x2x32xf32> to vector<2x32xf32>
    %279 = vector.shape_cast %269 : vector<2x32xf32> to vector<1x2x32xf32>
    tpu.vector_store %arg7[%c3, %c0_52, %c0_53], %279 {strides = array<i32>} : memref<8x2x64xf32, #tpu.memory_space<vmem>>, vector<1x2x32xf32>,
    %c4 = arith.constant 4 : index
    %c0_54 = arith.constant 0 : index
    %c32_55 = arith.constant 32 : index
    %280 = vector.load %arg7[%c4, %c0_54, %c32_55] : memref<8x2x64xf32, #tpu.memory_space<vmem>>, vector<1x2x32xf32>
    %281 = vector.shape_cast %280 : vector<1x2x32xf32> to vector<2x32xf32>
    %282 = vector.shape_cast %275 : vector<2x32xf32> to vector<1x2x32xf32>
    tpu.vector_store %arg7[%c4, %c0_54, %c32_55], %282 {strides = array<i32>} : memref<8x2x64xf32, #tpu.memory_space<vmem>>, vector<1x2x32xf32>,
    %cst_56 = arith.constant dense<0.000000e+00> : vector<2x192xf32>
    %283 = tpu.matmul %276, %8, %cst_56 {dimension_numbers = #tpu.dot_dimension_numbers<[1], [0], [0], [1], [0, 0, 1, 1], [], []>} : vector<2x64xf32>, vector<64x192xf32>, vector<2x192xf32> -> vector<2x192xf32>
    %284 = vector.broadcast %9 : vector<1x192xf32> to vector<2x192xf32>
    %285 = arith.addf %283, %284 : vector<2x192xf32>
    %286 = vector.extract_strided_slice %7 {offsets = [4, 0, 0], sizes = [1, 2, 192], strides = [1, 1, 1]} : vector<8x2x192xf32> to vector<1x2x192xf32>
    %287 = vector.shape_cast %286 : vector<1x2x192xf32> to vector<2x192xf32>
    %288 = vector.extract_strided_slice %7 {offsets = [3, 0, 0], sizes = [1, 2, 192], strides = [1, 1, 1]} : vector<8x2x192xf32> to vector<1x2x192xf32>
    %289 = vector.shape_cast %288 : vector<1x2x192xf32> to vector<2x192xf32>
    %290 = vector.extract_strided_slice %287 {offsets = [0, 0], sizes = [2, 32], strides = [1, 1]} : vector<2x192xf32> to vector<2x32xf32>
    %291 = vector.extract_strided_slice %285 {offsets = [0, 0], sizes = [2, 32], strides = [1, 1]} : vector<2x192xf32> to vector<2x32xf32>
    %292 = arith.addf %290, %291 : vector<2x32xf32>
    %293 = arith.negf %292 : vector<2x32xf32>
    %294 = math.exp %293 : vector<2x32xf32>
    %cst_57 = arith.constant 1.000000e+00 : f32
    %295 = vector.broadcast %cst_57 : f32 to vector<2x32xf32>
    %296 = arith.addf %295, %294 : vector<2x32xf32>
    %297 = arith.divf %295, %296 : vector<2x32xf32>
    %298 = vector.extract_strided_slice %287 {offsets = [0, 32], sizes = [2, 32], strides = [1, 1]} : vector<2x192xf32> to vector<2x32xf32>
    %299 = vector.extract_strided_slice %285 {offsets = [0, 32], sizes = [2, 32], strides = [1, 1]} : vector<2x192xf32> to vector<2x32xf32>
    %300 = arith.addf %298, %299 : vector<2x32xf32>
    %301 = arith.negf %300 : vector<2x32xf32>
    %302 = math.exp %301 : vector<2x32xf32>
    %cst_58 = arith.constant 1.000000e+00 : f32
    %303 = vector.broadcast %cst_58 : f32 to vector<2x32xf32>
    %304 = arith.addf %303, %302 : vector<2x32xf32>
    %305 = arith.divf %303, %304 : vector<2x32xf32>
    %306 = vector.extract_strided_slice %287 {offsets = [0, 64], sizes = [2, 32], strides = [1, 1]} : vector<2x192xf32> to vector<2x32xf32>
    %307 = vector.extract_strided_slice %285 {offsets = [0, 64], sizes = [2, 32], strides = [1, 1]} : vector<2x192xf32> to vector<2x32xf32>
    %308 = arith.mulf %297, %307 : vector<2x32xf32>
    %309 = arith.addf %306, %308 : vector<2x32xf32>
    %310 = math.tanh %309 : vector<2x32xf32>
    %311 = vector.extract_strided_slice %289 {offsets = [0, 96], sizes = [2, 32], strides = [1, 1]} : vector<2x192xf32> to vector<2x32xf32>
    %312 = vector.extract_strided_slice %285 {offsets = [0, 96], sizes = [2, 32], strides = [1, 1]} : vector<2x192xf32> to vector<2x32xf32>
    %313 = arith.addf %311, %312 : vector<2x32xf32>
    %314 = arith.negf %313 : vector<2x32xf32>
    %315 = math.exp %314 : vector<2x32xf32>
    %cst_59 = arith.constant 1.000000e+00 : f32
    %316 = vector.broadcast %cst_59 : f32 to vector<2x32xf32>
    %317 = arith.addf %316, %315 : vector<2x32xf32>
    %318 = arith.divf %316, %317 : vector<2x32xf32>
    %319 = vector.extract_strided_slice %289 {offsets = [0, 128], sizes = [2, 32], strides = [1, 1]} : vector<2x192xf32> to vector<2x32xf32>
    %320 = vector.extract_strided_slice %285 {offsets = [0, 128], sizes = [2, 32], strides = [1, 1]} : vector<2x192xf32> to vector<2x32xf32>
    %321 = arith.addf %319, %320 : vector<2x32xf32>
    %322 = arith.negf %321 : vector<2x32xf32>
    %323 = math.exp %322 : vector<2x32xf32>
    %cst_60 = arith.constant 1.000000e+00 : f32
    %324 = vector.broadcast %cst_60 : f32 to vector<2x32xf32>
    %325 = arith.addf %324, %323 : vector<2x32xf32>
    %326 = arith.divf %324, %325 : vector<2x32xf32>
    %327 = vector.extract_strided_slice %289 {offsets = [0, 160], sizes = [2, 32], strides = [1, 1]} : vector<2x192xf32> to vector<2x32xf32>
    %328 = vector.extract_strided_slice %285 {offsets = [0, 160], sizes = [2, 32], strides = [1, 1]} : vector<2x192xf32> to vector<2x32xf32>
    %329 = arith.mulf %318, %328 : vector<2x32xf32>
    %330 = arith.addf %327, %329 : vector<2x32xf32>
    %331 = math.tanh %330 : vector<2x32xf32>
    %cst_61 = arith.constant 1.000000e+00 : f32
    %332 = vector.broadcast %cst_61 : f32 to vector<2x32xf32>
    %333 = arith.subf %332, %305 : vector<2x32xf32>
    %334 = arith.mulf %333, %310 : vector<2x32xf32>
    %335 = vector.extract_strided_slice %276 {offsets = [0, 0], sizes = [2, 32], strides = [1, 1]} : vector<2x64xf32> to vector<2x32xf32>
    %336 = arith.mulf %305, %335 : vector<2x32xf32>
    %337 = arith.addf %334, %336 : vector<2x32xf32>
    %cst_62 = arith.constant 1.000000e+00 : f32
    %338 = vector.broadcast %cst_62 : f32 to vector<2x32xf32>
    %339 = arith.subf %338, %326 : vector<2x32xf32>
    %340 = arith.mulf %339, %331 : vector<2x32xf32>
    %341 = vector.extract_strided_slice %276 {offsets = [0, 32], sizes = [2, 32], strides = [1, 1]} : vector<2x64xf32> to vector<2x32xf32>
    %342 = arith.mulf %326, %341 : vector<2x32xf32>
    %343 = arith.addf %340, %342 : vector<2x32xf32>
    %344 = tpu.concatenate %337, %343 in 1 : vector<2x32xf32>, vector<2x32xf32> -> vector<2x64xf32>
    %c4_63 = arith.constant 4 : index
    %c0_64 = arith.constant 0 : index
    %c0_65 = arith.constant 0 : index
    %345 = vector.load %arg7[%c4_63, %c0_64, %c0_65] : memref<8x2x64xf32, #tpu.memory_space<vmem>>, vector<1x2x32xf32>
    %346 = vector.shape_cast %345 : vector<1x2x32xf32> to vector<2x32xf32>
    %347 = vector.shape_cast %337 : vector<2x32xf32> to vector<1x2x32xf32>
    tpu.vector_store %arg7[%c4_63, %c0_64, %c0_65], %347 {strides = array<i32>} : memref<8x2x64xf32, #tpu.memory_space<vmem>>, vector<1x2x32xf32>,
    %c3_66 = arith.constant 3 : index
    %c0_67 = arith.constant 0 : index
    %c32_68 = arith.constant 32 : index
    %348 = vector.load %arg7[%c3_66, %c0_67, %c32_68] : memref<8x2x64xf32, #tpu.memory_space<vmem>>, vector<1x2x32xf32>
    %349 = vector.shape_cast %348 : vector<1x2x32xf32> to vector<2x32xf32>
    %350 = vector.shape_cast %343 : vector<2x32xf32> to vector<1x2x32xf32>
    tpu.vector_store %arg7[%c3_66, %c0_67, %c32_68], %350 {strides = array<i32>} : memref<8x2x64xf32, #tpu.memory_space<vmem>>, vector<1x2x32xf32>,
    %cst_69 = arith.constant dense<0.000000e+00> : vector<2x192xf32>
    %351 = tpu.matmul %344, %8, %cst_69 {dimension_numbers = #tpu.dot_dimension_numbers<[1], [0], [0], [1], [0, 0, 1, 1], [], []>} : vector<2x64xf32>, vector<64x192xf32>, vector<2x192xf32> -> vector<2x192xf32>
    %352 = vector.broadcast %9 : vector<1x192xf32> to vector<2x192xf32>
    %353 = arith.addf %351, %352 : vector<2x192xf32>
    %354 = vector.extract_strided_slice %7 {offsets = [5, 0, 0], sizes = [1, 2, 192], strides = [1, 1, 1]} : vector<8x2x192xf32> to vector<1x2x192xf32>
    %355 = vector.shape_cast %354 : vector<1x2x192xf32> to vector<2x192xf32>
    %356 = vector.extract_strided_slice %7 {offsets = [2, 0, 0], sizes = [1, 2, 192], strides = [1, 1, 1]} : vector<8x2x192xf32> to vector<1x2x192xf32>
    %357 = vector.shape_cast %356 : vector<1x2x192xf32> to vector<2x192xf32>
    %358 = vector.extract_strided_slice %355 {offsets = [0, 0], sizes = [2, 32], strides = [1, 1]} : vector<2x192xf32> to vector<2x32xf32>
    %359 = vector.extract_strided_slice %353 {offsets = [0, 0], sizes = [2, 32], strides = [1, 1]} : vector<2x192xf32> to vector<2x32xf32>
    %360 = arith.addf %358, %359 : vector<2x32xf32>
    %361 = arith.negf %360 : vector<2x32xf32>
    %362 = math.exp %361 : vector<2x32xf32>
    %cst_70 = arith.constant 1.000000e+00 : f32
    %363 = vector.broadcast %cst_70 : f32 to vector<2x32xf32>
    %364 = arith.addf %363, %362 : vector<2x32xf32>
    %365 = arith.divf %363, %364 : vector<2x32xf32>
    %366 = vector.extract_strided_slice %355 {offsets = [0, 32], sizes = [2, 32], strides = [1, 1]} : vector<2x192xf32> to vector<2x32xf32>
    %367 = vector.extract_strided_slice %353 {offsets = [0, 32], sizes = [2, 32], strides = [1, 1]} : vector<2x192xf32> to vector<2x32xf32>
    %368 = arith.addf %366, %367 : vector<2x32xf32>
    %369 = arith.negf %368 : vector<2x32xf32>
    %370 = math.exp %369 : vector<2x32xf32>
    %cst_71 = arith.constant 1.000000e+00 : f32
    %371 = vector.broadcast %cst_71 : f32 to vector<2x32xf32>
    %372 = arith.addf %371, %370 : vector<2x32xf32>
    %373 = arith.divf %371, %372 : vector<2x32xf32>
    %374 = vector.extract_strided_slice %355 {offsets = [0, 64], sizes = [2, 32], strides = [1, 1]} : vector<2x192xf32> to vector<2x32xf32>
    %375 = vector.extract_strided_slice %353 {offsets = [0, 64], sizes = [2, 32], strides = [1, 1]} : vector<2x192xf32> to vector<2x32xf32>
    %376 = arith.mulf %365, %375 : vector<2x32xf32>
    %377 = arith.addf %374, %376 : vector<2x32xf32>
    %378 = math.tanh %377 : vector<2x32xf32>
    %379 = vector.extract_strided_slice %357 {offsets = [0, 96], sizes = [2, 32], strides = [1, 1]} : vector<2x192xf32> to vector<2x32xf32>
    %380 = vector.extract_strided_slice %353 {offsets = [0, 96], sizes = [2, 32], strides = [1, 1]} : vector<2x192xf32> to vector<2x32xf32>
    %381 = arith.addf %379, %380 : vector<2x32xf32>
    %382 = arith.negf %381 : vector<2x32xf32>
    %383 = math.exp %382 : vector<2x32xf32>
    %cst_72 = arith.constant 1.000000e+00 : f32
    %384 = vector.broadcast %cst_72 : f32 to vector<2x32xf32>
    %385 = arith.addf %384, %383 : vector<2x32xf32>
    %386 = arith.divf %384, %385 : vector<2x32xf32>
    %387 = vector.extract_strided_slice %357 {offsets = [0, 128], sizes = [2, 32], strides = [1, 1]} : vector<2x192xf32> to vector<2x32xf32>
    %388 = vector.extract_strided_slice %353 {offsets = [0, 128], sizes = [2, 32], strides = [1, 1]} : vector<2x192xf32> to vector<2x32xf32>
    %389 = arith.addf %387, %388 : vector<2x32xf32>
    %390 = arith.negf %389 : vector<2x32xf32>
    %391 = math.exp %390 : vector<2x32xf32>
    %cst_73 = arith.constant 1.000000e+00 : f32
    %392 = vector.broadcast %cst_73 : f32 to vector<2x32xf32>
    %393 = arith.addf %392, %391 : vector<2x32xf32>
    %394 = arith.divf %392, %393 : vector<2x32xf32>
    %395 = vector.extract_strided_slice %357 {offsets = [0, 160], sizes = [2, 32], strides = [1, 1]} : vector<2x192xf32> to vector<2x32xf32>
    %396 = vector.extract_strided_slice %353 {offsets = [0, 160], sizes = [2, 32], strides = [1, 1]} : vector<2x192xf32> to vector<2x32xf32>
    %397 = arith.mulf %386, %396 : vector<2x32xf32>
    %398 = arith.addf %395, %397 : vector<2x32xf32>
    %399 = math.tanh %398 : vector<2x32xf32>
    %cst_74 = arith.constant 1.000000e+00 : f32
    %400 = vector.broadcast %cst_74 : f32 to vector<2x32xf32>
    %401 = arith.subf %400, %373 : vector<2x32xf32>
    %402 = arith.mulf %401, %378 : vector<2x32xf32>
    %403 = vector.extract_strided_slice %344 {offsets = [0, 0], sizes = [2, 32], strides = [1, 1]} : vector<2x64xf32> to vector<2x32xf32>
    %404 = arith.mulf %373, %403 : vector<2x32xf32>
    %405 = arith.addf %402, %404 : vector<2x32xf32>
    %cst_75 = arith.constant 1.000000e+00 : f32
    %406 = vector.broadcast %cst_75 : f32 to vector<2x32xf32>
    %407 = arith.subf %406, %394 : vector<2x32xf32>
    %408 = arith.mulf %407, %399 : vector<2x32xf32>
    %409 = vector.extract_strided_slice %344 {offsets = [0, 32], sizes = [2, 32], strides = [1, 1]} : vector<2x64xf32> to vector<2x32xf32>
    %410 = arith.mulf %394, %409 : vector<2x32xf32>
    %411 = arith.addf %408, %410 : vector<2x32xf32>
    %412 = tpu.concatenate %405, %411 in 1 : vector<2x32xf32>, vector<2x32xf32> -> vector<2x64xf32>
    %c5_76 = arith.constant 5 : index
    %c0_77 = arith.constant 0 : index
    %c0_78 = arith.constant 0 : index
    %413 = vector.load %arg7[%c5_76, %c0_77, %c0_78] : memref<8x2x64xf32, #tpu.memory_space<vmem>>, vector<1x2x32xf32>
    %414 = vector.shape_cast %413 : vector<1x2x32xf32> to vector<2x32xf32>
    %415 = vector.shape_cast %405 : vector<2x32xf32> to vector<1x2x32xf32>
    tpu.vector_store %arg7[%c5_76, %c0_77, %c0_78], %415 {strides = array<i32>} : memref<8x2x64xf32, #tpu.memory_space<vmem>>, vector<1x2x32xf32>,
    %c2_79 = arith.constant 2 : index
    %c0_80 = arith.constant 0 : index
    %c32_81 = arith.constant 32 : index
    %416 = vector.load %arg7[%c2_79, %c0_80, %c32_81] : memref<8x2x64xf32, #tpu.memory_space<vmem>>, vector<1x2x32xf32>
    %417 = vector.shape_cast %416 : vector<1x2x32xf32> to vector<2x32xf32>
    %418 = vector.shape_cast %411 : vector<2x32xf32> to vector<1x2x32xf32>
    tpu.vector_store %arg7[%c2_79, %c0_80, %c32_81], %418 {strides = array<i32>} : memref<8x2x64xf32, #tpu.memory_space<vmem>>, vector<1x2x32xf32>,
    %cst_82 = arith.constant dense<0.000000e+00> : vector<2x192xf32>
    %419 = tpu.matmul %412, %8, %cst_82 {dimension_numbers = #tpu.dot_dimension_numbers<[1], [0], [0], [1], [0, 0, 1, 1], [], []>} : vector<2x64xf32>, vector<64x192xf32>, vector<2x192xf32> -> vector<2x192xf32>
    %420 = vector.broadcast %9 : vector<1x192xf32> to vector<2x192xf32>
    %421 = arith.addf %419, %420 : vector<2x192xf32>
    %422 = vector.extract_strided_slice %7 {offsets = [6, 0, 0], sizes = [1, 2, 192], strides = [1, 1, 1]} : vector<8x2x192xf32> to vector<1x2x192xf32>
    %423 = vector.shape_cast %422 : vector<1x2x192xf32> to vector<2x192xf32>
    %424 = vector.extract_strided_slice %7 {offsets = [1, 0, 0], sizes = [1, 2, 192], strides = [1, 1, 1]} : vector<8x2x192xf32> to vector<1x2x192xf32>
    %425 = vector.shape_cast %424 : vector<1x2x192xf32> to vector<2x192xf32>
    %426 = vector.extract_strided_slice %423 {offsets = [0, 0], sizes = [2, 32], strides = [1, 1]} : vector<2x192xf32> to vector<2x32xf32>
    %427 = vector.extract_strided_slice %421 {offsets = [0, 0], sizes = [2, 32], strides = [1, 1]} : vector<2x192xf32> to vector<2x32xf32>
    %428 = arith.addf %426, %427 : vector<2x32xf32>
    %429 = arith.negf %428 : vector<2x32xf32>
    %430 = math.exp %429 : vector<2x32xf32>
    %cst_83 = arith.constant 1.000000e+00 : f32
    %431 = vector.broadcast %cst_83 : f32 to vector<2x32xf32>
    %432 = arith.addf %431, %430 : vector<2x32xf32>
    %433 = arith.divf %431, %432 : vector<2x32xf32>
    %434 = vector.extract_strided_slice %423 {offsets = [0, 32], sizes = [2, 32], strides = [1, 1]} : vector<2x192xf32> to vector<2x32xf32>
    %435 = vector.extract_strided_slice %421 {offsets = [0, 32], sizes = [2, 32], strides = [1, 1]} : vector<2x192xf32> to vector<2x32xf32>
    %436 = arith.addf %434, %435 : vector<2x32xf32>
    %437 = arith.negf %436 : vector<2x32xf32>
    %438 = math.exp %437 : vector<2x32xf32>
    %cst_84 = arith.constant 1.000000e+00 : f32
    %439 = vector.broadcast %cst_84 : f32 to vector<2x32xf32>
    %440 = arith.addf %439, %438 : vector<2x32xf32>
    %441 = arith.divf %439, %440 : vector<2x32xf32>
    %442 = vector.extract_strided_slice %423 {offsets = [0, 64], sizes = [2, 32], strides = [1, 1]} : vector<2x192xf32> to vector<2x32xf32>
    %443 = vector.extract_strided_slice %421 {offsets = [0, 64], sizes = [2, 32], strides = [1, 1]} : vector<2x192xf32> to vector<2x32xf32>
    %444 = arith.mulf %433, %443 : vector<2x32xf32>
    %445 = arith.addf %442, %444 : vector<2x32xf32>
    %446 = math.tanh %445 : vector<2x32xf32>
    %447 = vector.extract_strided_slice %425 {offsets = [0, 96], sizes = [2, 32], strides = [1, 1]} : vector<2x192xf32> to vector<2x32xf32>
    %448 = vector.extract_strided_slice %421 {offsets = [0, 96], sizes = [2, 32], strides = [1, 1]} : vector<2x192xf32> to vector<2x32xf32>
    %449 = arith.addf %447, %448 : vector<2x32xf32>
    %450 = arith.negf %449 : vector<2x32xf32>
    %451 = math.exp %450 : vector<2x32xf32>
    %cst_85 = arith.constant 1.000000e+00 : f32
    %452 = vector.broadcast %cst_85 : f32 to vector<2x32xf32>
    %453 = arith.addf %452, %451 : vector<2x32xf32>
    %454 = arith.divf %452, %453 : vector<2x32xf32>
    %455 = vector.extract_strided_slice %425 {offsets = [0, 128], sizes = [2, 32], strides = [1, 1]} : vector<2x192xf32> to vector<2x32xf32>
    %456 = vector.extract_strided_slice %421 {offsets = [0, 128], sizes = [2, 32], strides = [1, 1]} : vector<2x192xf32> to vector<2x32xf32>
    %457 = arith.addf %455, %456 : vector<2x32xf32>
    %458 = arith.negf %457 : vector<2x32xf32>
    %459 = math.exp %458 : vector<2x32xf32>
    %cst_86 = arith.constant 1.000000e+00 : f32
    %460 = vector.broadcast %cst_86 : f32 to vector<2x32xf32>
    %461 = arith.addf %460, %459 : vector<2x32xf32>
    %462 = arith.divf %460, %461 : vector<2x32xf32>
    %463 = vector.extract_strided_slice %425 {offsets = [0, 160], sizes = [2, 32], strides = [1, 1]} : vector<2x192xf32> to vector<2x32xf32>
    %464 = vector.extract_strided_slice %421 {offsets = [0, 160], sizes = [2, 32], strides = [1, 1]} : vector<2x192xf32> to vector<2x32xf32>
    %465 = arith.mulf %454, %464 : vector<2x32xf32>
    %466 = arith.addf %463, %465 : vector<2x32xf32>
    %467 = math.tanh %466 : vector<2x32xf32>
    %cst_87 = arith.constant 1.000000e+00 : f32
    %468 = vector.broadcast %cst_87 : f32 to vector<2x32xf32>
    %469 = arith.subf %468, %441 : vector<2x32xf32>
    %470 = arith.mulf %469, %446 : vector<2x32xf32>
    %471 = vector.extract_strided_slice %412 {offsets = [0, 0], sizes = [2, 32], strides = [1, 1]} : vector<2x64xf32> to vector<2x32xf32>
    %472 = arith.mulf %441, %471 : vector<2x32xf32>
    %473 = arith.addf %470, %472 : vector<2x32xf32>
    %cst_88 = arith.constant 1.000000e+00 : f32
    %474 = vector.broadcast %cst_88 : f32 to vector<2x32xf32>
    %475 = arith.subf %474, %462 : vector<2x32xf32>
    %476 = arith.mulf %475, %467 : vector<2x32xf32>
    %477 = vector.extract_strided_slice %412 {offsets = [0, 32], sizes = [2, 32], strides = [1, 1]} : vector<2x64xf32> to vector<2x32xf32>
    %478 = arith.mulf %462, %477 : vector<2x32xf32>
    %479 = arith.addf %476, %478 : vector<2x32xf32>
    %480 = tpu.concatenate %473, %479 in 1 : vector<2x32xf32>, vector<2x32xf32> -> vector<2x64xf32>
    %c6_89 = arith.constant 6 : index
    %c0_90 = arith.constant 0 : index
    %c0_91 = arith.constant 0 : index
    %481 = vector.load %arg7[%c6_89, %c0_90, %c0_91] : memref<8x2x64xf32, #tpu.memory_space<vmem>>, vector<1x2x32xf32>
    %482 = vector.shape_cast %481 : vector<1x2x32xf32> to vector<2x32xf32>
    %483 = vector.shape_cast %473 : vector<2x32xf32> to vector<1x2x32xf32>
    tpu.vector_store %arg7[%c6_89, %c0_90, %c0_91], %483 {strides = array<i32>} : memref<8x2x64xf32, #tpu.memory_space<vmem>>, vector<1x2x32xf32>,
    %c1_92 = arith.constant 1 : index
    %c0_93 = arith.constant 0 : index
    %c32_94 = arith.constant 32 : index
    %484 = vector.load %arg7[%c1_92, %c0_93, %c32_94] : memref<8x2x64xf32, #tpu.memory_space<vmem>>, vector<1x2x32xf32>
    %485 = vector.shape_cast %484 : vector<1x2x32xf32> to vector<2x32xf32>
    %486 = vector.shape_cast %479 : vector<2x32xf32> to vector<1x2x32xf32>
    tpu.vector_store %arg7[%c1_92, %c0_93, %c32_94], %486 {strides = array<i32>} : memref<8x2x64xf32, #tpu.memory_space<vmem>>, vector<1x2x32xf32>,
    %cst_95 = arith.constant dense<0.000000e+00> : vector<2x192xf32>
    %487 = tpu.matmul %480, %8, %cst_95 {dimension_numbers = #tpu.dot_dimension_numbers<[1], [0], [0], [1], [0, 0, 1, 1], [], []>} : vector<2x64xf32>, vector<64x192xf32>, vector<2x192xf32> -> vector<2x192xf32>
    %488 = vector.broadcast %9 : vector<1x192xf32> to vector<2x192xf32>
    %489 = arith.addf %487, %488 : vector<2x192xf32>
    %490 = vector.extract_strided_slice %7 {offsets = [7, 0, 0], sizes = [1, 2, 192], strides = [1, 1, 1]} : vector<8x2x192xf32> to vector<1x2x192xf32>
    %491 = vector.shape_cast %490 : vector<1x2x192xf32> to vector<2x192xf32>
    %492 = vector.extract_strided_slice %7 {offsets = [0, 0, 0], sizes = [1, 2, 192], strides = [1, 1, 1]} : vector<8x2x192xf32> to vector<1x2x192xf32>
    %493 = vector.shape_cast %492 : vector<1x2x192xf32> to vector<2x192xf32>
    %494 = vector.extract_strided_slice %491 {offsets = [0, 0], sizes = [2, 32], strides = [1, 1]} : vector<2x192xf32> to vector<2x32xf32>
    %495 = vector.extract_strided_slice %489 {offsets = [0, 0], sizes = [2, 32], strides = [1, 1]} : vector<2x192xf32> to vector<2x32xf32>
    %496 = arith.addf %494, %495 : vector<2x32xf32>
    %497 = arith.negf %496 : vector<2x32xf32>
    %498 = math.exp %497 : vector<2x32xf32>
    %cst_96 = arith.constant 1.000000e+00 : f32
    %499 = vector.broadcast %cst_96 : f32 to vector<2x32xf32>
    %500 = arith.addf %499, %498 : vector<2x32xf32>
    %501 = arith.divf %499, %500 : vector<2x32xf32>
    %502 = vector.extract_strided_slice %491 {offsets = [0, 32], sizes = [2, 32], strides = [1, 1]} : vector<2x192xf32> to vector<2x32xf32>
    %503 = vector.extract_strided_slice %489 {offsets = [0, 32], sizes = [2, 32], strides = [1, 1]} : vector<2x192xf32> to vector<2x32xf32>
    %504 = arith.addf %502, %503 : vector<2x32xf32>
    %505 = arith.negf %504 : vector<2x32xf32>
    %506 = math.exp %505 : vector<2x32xf32>
    %cst_97 = arith.constant 1.000000e+00 : f32
    %507 = vector.broadcast %cst_97 : f32 to vector<2x32xf32>
    %508 = arith.addf %507, %506 : vector<2x32xf32>
    %509 = arith.divf %507, %508 : vector<2x32xf32>
    %510 = vector.extract_strided_slice %491 {offsets = [0, 64], sizes = [2, 32], strides = [1, 1]} : vector<2x192xf32> to vector<2x32xf32>
    %511 = vector.extract_strided_slice %489 {offsets = [0, 64], sizes = [2, 32], strides = [1, 1]} : vector<2x192xf32> to vector<2x32xf32>
    %512 = arith.mulf %501, %511 : vector<2x32xf32>
    %513 = arith.addf %510, %512 : vector<2x32xf32>
    %514 = math.tanh %513 : vector<2x32xf32>
    %515 = vector.extract_strided_slice %493 {offsets = [0, 96], sizes = [2, 32], strides = [1, 1]} : vector<2x192xf32> to vector<2x32xf32>
    %516 = vector.extract_strided_slice %489 {offsets = [0, 96], sizes = [2, 32], strides = [1, 1]} : vector<2x192xf32> to vector<2x32xf32>
    %517 = arith.addf %515, %516 : vector<2x32xf32>
    %518 = arith.negf %517 : vector<2x32xf32>
    %519 = math.exp %518 : vector<2x32xf32>
    %cst_98 = arith.constant 1.000000e+00 : f32
    %520 = vector.broadcast %cst_98 : f32 to vector<2x32xf32>
    %521 = arith.addf %520, %519 : vector<2x32xf32>
    %522 = arith.divf %520, %521 : vector<2x32xf32>
    %523 = vector.extract_strided_slice %493 {offsets = [0, 128], sizes = [2, 32], strides = [1, 1]} : vector<2x192xf32> to vector<2x32xf32>
    %524 = vector.extract_strided_slice %489 {offsets = [0, 128], sizes = [2, 32], strides = [1, 1]} : vector<2x192xf32> to vector<2x32xf32>
    %525 = arith.addf %523, %524 : vector<2x32xf32>
    %526 = arith.negf %525 : vector<2x32xf32>
    %527 = math.exp %526 : vector<2x32xf32>
    %cst_99 = arith.constant 1.000000e+00 : f32
    %528 = vector.broadcast %cst_99 : f32 to vector<2x32xf32>
    %529 = arith.addf %528, %527 : vector<2x32xf32>
    %530 = arith.divf %528, %529 : vector<2x32xf32>
    %531 = vector.extract_strided_slice %493 {offsets = [0, 160], sizes = [2, 32], strides = [1, 1]} : vector<2x192xf32> to vector<2x32xf32>
    %532 = vector.extract_strided_slice %489 {offsets = [0, 160], sizes = [2, 32], strides = [1, 1]} : vector<2x192xf32> to vector<2x32xf32>
    %533 = arith.mulf %522, %532 : vector<2x32xf32>
    %534 = arith.addf %531, %533 : vector<2x32xf32>
    %535 = math.tanh %534 : vector<2x32xf32>
    %cst_100 = arith.constant 1.000000e+00 : f32
    %536 = vector.broadcast %cst_100 : f32 to vector<2x32xf32>
    %537 = arith.subf %536, %509 : vector<2x32xf32>
    %538 = arith.mulf %537, %514 : vector<2x32xf32>
    %539 = vector.extract_strided_slice %480 {offsets = [0, 0], sizes = [2, 32], strides = [1, 1]} : vector<2x64xf32> to vector<2x32xf32>
    %540 = arith.mulf %509, %539 : vector<2x32xf32>
    %541 = arith.addf %538, %540 : vector<2x32xf32>
    %cst_101 = arith.constant 1.000000e+00 : f32
    %542 = vector.broadcast %cst_101 : f32 to vector<2x32xf32>
    %543 = arith.subf %542, %530 : vector<2x32xf32>
    %544 = arith.mulf %543, %535 : vector<2x32xf32>
    %545 = vector.extract_strided_slice %480 {offsets = [0, 32], sizes = [2, 32], strides = [1, 1]} : vector<2x64xf32> to vector<2x32xf32>
    %546 = arith.mulf %530, %545 : vector<2x32xf32>
    %547 = arith.addf %544, %546 : vector<2x32xf32>
    %c7_102 = arith.constant 7 : index
    %c0_103 = arith.constant 0 : index
    %c0_104 = arith.constant 0 : index
    %548 = vector.load %arg7[%c7_102, %c0_103, %c0_104] : memref<8x2x64xf32, #tpu.memory_space<vmem>>, vector<1x2x32xf32>
    %549 = vector.shape_cast %548 : vector<1x2x32xf32> to vector<2x32xf32>
    %550 = vector.shape_cast %541 : vector<2x32xf32> to vector<1x2x32xf32>
    tpu.vector_store %arg7[%c7_102, %c0_103, %c0_104], %550 {strides = array<i32>} : memref<8x2x64xf32, #tpu.memory_space<vmem>>, vector<1x2x32xf32>,
    %c0_105 = arith.constant 0 : index
    %c0_106 = arith.constant 0 : index
    %c32_107 = arith.constant 32 : index
    %551 = vector.load %arg7[%c0_105, %c0_106, %c32_107] : memref<8x2x64xf32, #tpu.memory_space<vmem>>, vector<1x2x32xf32>
    %552 = vector.shape_cast %551 : vector<1x2x32xf32> to vector<2x32xf32>
    %553 = vector.shape_cast %547 : vector<2x32xf32> to vector<1x2x32xf32>
    tpu.vector_store %arg7[%c0_105, %c0_106, %c32_107], %553 {strides = array<i32>} : memref<8x2x64xf32, #tpu.memory_space<vmem>>, vector<1x2x32xf32>,
    return
  }
  func.func @transform_0(%arg0: i32) -> (i32, i32, i32) {
    %c0_i32 = arith.constant 0 : i32
    %c0_i32_0 = arith.constant 0 : i32
    %c0_i32_1 = arith.constant 0 : i32
    return %c0_i32, %arg0, %c0_i32_0 : i32, i32, i32
  }
  func.func @transform_1(%arg0: i32) -> (i32, i32) {
    %c0_i32 = arith.constant 0 : i32
    %c0_i32_0 = arith.constant 0 : i32
    return %arg0, %c0_i32 : i32, i32
  }
  func.func @transform_2(%arg0: i32) -> (i32, i32) {
    %c0_i32 = arith.constant 0 : i32
    %c0_i32_0 = arith.constant 0 : i32
    %c0_i32_1 = arith.constant 0 : i32
    return %c0_i32, %c0_i32_0 : i32, i32
  }
  func.func @transform_3(%arg0: i32) -> (i32, i32) {
    %c0_i32 = arith.constant 0 : i32
    %c0_i32_0 = arith.constant 0 : i32
    %c0_i32_1 = arith.constant 0 : i32
    return %c0_i32, %c0_i32_0 : i32, i32
  }
  func.func @transform_4(%arg0: i32) -> (i32, i32) {
    %c0_i32 = arith.constant 0 : i32
    %c0_i32_0 = arith.constant 0 : i32
    %c0_i32_1 = arith.constant 0 : i32
    return %c0_i32, %c0_i32_0 : i32, i32
  }
  func.func @transform_5(%arg0: i32) -> (i32, i32) {
    %c0_i32 = arith.constant 0 : i32
    %c0_i32_0 = arith.constant 0 : i32
    %c0_i32_1 = arith.constant 0 : i32
    return %c0_i32, %c0_i32_0 : i32, i32
  }
  func.func @transform_6(%arg0: i32) -> (i32, i32, i32) {
    %c0_i32 = arith.constant 0 : i32
    %c0_i32_0 = arith.constant 0 : i32
    %c0_i32_1 = arith.constant 0 : i32
    return %c0_i32, %arg0, %c0_i32_0 : i32, i32, i32
  }
}

</mosaic_0001>

<bundles_post_ra>
// kernel: communication_channel_forward.1
= control target key start
LH: loop header
LB: loop body
LE: loop exit
PB: predicated region body
PF: predicated region fallthrough
CT: control target
= control target key end

     0   :  { %v37_v0 = vlaneseq  ;;  %v1954_v4 = vmov 0.0   ;;  %v1955_v5 = vmov 1983009808   ;;  %vm89_vm0 = vcmask 130048   ;;  %s1958_s7 = smov 96   ;;  %s2617_s4 = inlined_call_operand.vmem [shape: f32[64,192], index: 4, kind: input, shape index: {}]   ;;  %s2618_s2 = inlined_call_operand.vmem [shape: f32[16,192], index: 2, kind: input, shape index: {}]   ;;  %s2619_s0 = inlined_call_operand.vmem [shape: f32[8,2,16], index: 0, kind: input, shape index: {}]   ;;  %s2620_s1 = inlined_call_operand.vmem [shape: f32[2,64], index: 1, kind: input, shape index: {}]   ;;  %s2621_s3 = inlined_call_operand.vmem [shape: f32[1,192], index: 3, kind: input, shape index: {}]   ;;  %s2622_s5 = inlined_call_operand.vmem [shape: f32[1,192], index: 5, kind: input, shape index: {}]   ;;  %s2623_s6 = inlined_call_operand.vmem [shape: f32[8,2,64], index: 6, kind: output, shape index: {}]  }
   0x1   :  { %v1997_v1 = vld [vmem:[%s2617_s4 + $0x78] sm:$0xff]  ;;  %v2002_v2 = vld [vmem:[%s2617_s4 + $0x70] sm:$0xff]  ;;  %v2007_v3 = vld [vmem:[%s2617_s4 + $0x68] sm:$0xff]  ;;  %158 = vmatprep.mubr.f32.mxu0 %v1954_v4  ;;  %v58_v6 = vunpack.c.l.s4 %v1955_v5  ;;  %316 = vmatprep.mubr.f32.mxu1 %v1954_v4  ;;  %vm248_vm1 = vcmask 523264   ;;  %vm435_vm2 = vcmask 254976   ;;  %vm433_vm3 = vcmask 261120  }
   0x2   :  { %268 = vmatprep.subr.mxu1 %v1997_v1  ;;  %v2015_v7 = vld [vmem:[%s2617_s4 + $0x60] sm:$0xff]  ;;  %v34_v8 = vld [vmem:[%s2618_s2 + $0x18] sm:$0xff]  ;;  %v2020_v9 = vshrl.u32 %v37_v0, 7  ;;  %v33_v11 = vld [vmem:[%s2618_s2 + $0x10] sm:$0xff]  ;;  %vm438_vm4 = vcmask 517376  }
   0x3   :  { %269 = vmatpush1.msra.mxu1 %v2002_v2  ;;  %v2026_v10 = vld [vmem:[%s2617_s4 + $0x58] sm:$0xff]  ;;  %122 = vmatprep.subr.mxu0 %v34_v8  ;;  %v59_v12 = vunpack.c.0.s8 %v58_v6  ;;  %v2035_v13 = vld [vmem:[%s2617_s4 + $0x50] sm:$0xff]  ;;  %v32_v14 = vld [vmem:[%s2618_s2 + $0x8] sm:$0xff] }
   0x4   :  { %270 = vmatprep.subr.mxu1 %v2007_v3  ;;  %123 = vmatpush1.msra.mxu0 %v33_v11  ;;  %v31_v15 = vld [vmem:[%s2618_s2] sm:$0xff]  ;;  %v2047_v16 = vld [vmem:[%s2617_s4 + $0x48] sm:$0xff]  ;;  %v2074_v24 = vld [vmem:[%s2617_s4 + $0x38] sm:$0xff]  ;;  %v39_v46 = vsub.s32 0, %v2020_v9  ;;  %v43_v47 = vsub.s32 1, %v2020_v9 }
   0x5   :  { %271 = vmatpush1.msra.mxu1 %v2015_v7  ;;  %124 = vmatprep.subr.mxu0 %v32_v14  ;;  %v23_v17 = vld [vmem:[%s2619_s0] sm:$0x3]  ;;  %v24_v18 = vld [vmem:[%s2619_s0 + $0x2] sm:$0x3]  ;;  %v2056_v19 = vsub.s32 %v59_v12, %v2020_v9  ;;  %v25_v21 = vld [vmem:[%s2619_s0 + $0x4] sm:$0x3] }
   0x6   :  { %272 = vmatprep.subr.mxu1 %v2026_v10  ;;  %v2062_v20 = vld [vmem:[%s2617_s4 + $0x40] sm:$0xff]  ;;  %125 = vmatpush1.msra.mxu0 %v31_v15  ;;  %v55_v23 = vcombine.low %v23_v17, %v24_v18  ;;  %v2079_v26 = vld [vmem:[%s2617_s4 + $0x30] sm:$0xff]  ;;  %v27_v28 = vld [vmem:[%s2619_s0 + $0x8] sm:$0x3] }
   0x7   :  { %v26_v22 = vld [vmem:[%s2619_s0 + $0x6] sm:$0x3]  ;;  %273 = vmatpush1.msra.mxu1 %v2035_v13  ;;  %459 = vmatprep.subr.mxu0 %v1997_v1  ;;  %v28_v29 = vld [vmem:[%s2619_s0 + $0xa] sm:$0x3]  ;;  %v29_v30 = vld [vmem:[%s2619_s0 + $0xc] sm:$0x3] }
   0x8   :  { %v56_v25 = vcombine.low %v25_v21, %v26_v22  ;;  %274 = vmatprep.subr.mxu1 %v2047_v16  ;;  %v63_v27 = vrot.slane %v55_v23, %v2056_v19  ;;  %v2098_v32 = vld [vmem:[%s2617_s4 + $0x28] sm:$0xff]  ;;  %v72_v34 = vcombine.low %v27_v28, %v28_v29  ;;  %v2107_v35 = vld [vmem:[%s2617_s4 + $0x20] sm:$0xff]  ;;  %v2113_v38 = vld [vmem:[%s2617_s4 + $0x18] sm:$0xff] }
   0x9   :  { %275 = vmatpush1.msra.mxu1 %v2062_v20  ;;  %v30_v33 = vld [vmem:[%s2619_s0 + $0xe] sm:$0x3]  ;;  %v2121_v41 = vld [vmem:[%s2617_s4 + $0x10] sm:$0xff]  ;;  %v2135_v44 = vld [vmem:[%s2617_s4] sm:$0xff] }
   0xa   :  { %v70_v31 = vrot.slane %v56_v25, %v2056_v19  ;;  %276 = vmatprep.subr.mxu1 %v2074_v24  ;;  %v73_v36 = vcombine.low %v29_v30, %v30_v33  ;;  %v80_v39 = vrot.slane %v72_v34, %v2056_v19  ;;  %v2128_v42 = vld [vmem:[%s2617_s4 + $0x8] sm:$0xff]  ;;  %v2141_v45 = vld [vmem:[%s2620_s1] sm:$0x3] }
   0xb   :  { %277 = vmatpush1.msra.mxu1 %v2079_v26  ;;  %v35_v48 = vld [vmem:[%s2621_s3] sm:$0x3]  ;;  %s1956_s3 = smov 64  }
   0xc   :  { %v71_v37 = vcombine.low %v63_v27, %v70_v31  ;;  %278 = vmatprep.subr.mxu1 %v2098_v32  ;;  %v87_v40 = vrot.slane %v73_v36, %v2056_v19  ;;  %v40_v49 = vrot.slane %v35_v48, %v39_v46  ;;  %v235_v50 = vld [vmem:[%s2622_s5] sm:$0x3]  ;;  %v44_v51 = vrot.slane %v35_v48, %v43_v47  ;;  %s1957_s5 = smov 32  }
   0xd   :  { %279 = vmatpush1.msra.mxu1 %v2107_v35  ;;  %v2191_v53 = vrot.slane %v235_v50, %v39_v46  ;;  %v2197_v57 = vrot.slane %v235_v50, %v43_v47 }
   0xe   :  { %1758 = vmatmul.mubr.msk.f32.vlgmr.msra.gmra.mxu0 %vm89_vm0, %v71_v37  ;;  %280 = vmatprep.subr.mxu1 %v2113_v38  ;;  %v88_v43 = vcombine.low %v80_v39, %v87_v40  ;;  %v398_v40 = vrot.slane %v2141_v45, %v2056_v19 }
   0xf   :  { %164 = vmatprep.mubr.f32.mxu0 %v1954_v4  ;;  %281 = vmatpush1.msra.mxu1 %v2121_v41 }
  0x10   :  { %460 = vmatpush1.msra.mxu0 %v2002_v2  ;;  %282 = vmatprep.subr.mxu1 %v2128_v42 }
  0x11   :  { %461 = vmatprep.subr.mxu0 %v2007_v3  ;;  %283 = vmatpush1.msra.mxu1 %v2135_v44 }
  0x12   :  { %1759 = vmatmul.mubr.msk.f32.gmra.mxu0 %vm89_vm0, %v88_v43  ;;  %1760 = vmatmul.mubr.msk.f32.vlgmr.msra.gmra.mxu1 %vm248_vm1, %v2141_v45 }
  0x13   :  { %462 = vmatpush1.msra.mxu0 %v2015_v7  ;;  %507 = vmatprep.mubr.f32.mxu0 %v1954_v4 }
  0x14   :  { %463 = vmatprep.subr.mxu0 %v2026_v10  ;;  %648 = vmatprep.subr.mxu1 %v1997_v1 }
  0x15   :  { %464 = vmatpush1.msra.mxu0 %v2035_v13  ;;  %649 = vmatpush1.msra.mxu1 %v2002_v2 }
  0x16   :  { %465 = vmatprep.subr.mxu0 %v2047_v16  ;;  %650 = vmatprep.subr.mxu1 %v2007_v3 }
  0x17   :  { %466 = vmatpush1.msra.mxu0 %v2062_v20  ;;  %651 = vmatpush1.msra.mxu1 %v2015_v7 }
  0x18   :  { %467 = vmatprep.subr.mxu0 %v2074_v24  ;;  %652 = vmatprep.subr.mxu1 %v2026_v10 }
  0x19   :  { %468 = vmatpush1.msra.mxu0 %v2079_v26  ;;  %653 = vmatpush1.msra.mxu1 %v2035_v13 }
  0x1a   :  { %469 = vmatprep.subr.mxu0 %v2098_v32  ;;  %654 = vmatprep.subr.mxu1 %v2047_v16 }
  0x1b   :  { %470 = vmatpush1.msra.mxu0 %v2107_v35  ;;  %655 = vmatpush1.msra.mxu1 %v2062_v20 }
  0x1c   :  { %471 = vmatprep.subr.mxu0 %v2113_v38  ;;  %656 = vmatprep.subr.mxu1 %v2074_v24 }
  0x1d   :  { %472 = vmatpush1.msra.mxu0 %v2121_v41  ;;  %657 = vmatpush1.msra.mxu1 %v2079_v26 }
  0x1e   :  { %473 = vmatprep.subr.mxu0 %v2128_v42  ;;  %658 = vmatprep.subr.mxu1 %v2098_v32 }
  0x1f   :  { %474 = vmatpush1.msra.mxu0 %v2135_v44  ;;  %659 = vmatpush1.msra.mxu1 %v2107_v35 }
  0x20   :  { %696 = vmatprep.mubr.f32.mxu1 %v1954_v4  ;;  %660 = vmatprep.subr.mxu1 %v2113_v38 }
  0x21   :  { %837 = vmatprep.subr.mxu0 %v1997_v1  ;;  %661 = vmatpush1.msra.mxu1 %v2121_v41 }
  0x22   :  { %662 = vmatprep.subr.mxu1 %v2128_v42 }
  0x23   :  { %663 = vmatpush1.msra.mxu1 %v2135_v44 }
  0x24   :  { %1026 = vmatprep.subr.mxu1 %v1997_v1 }
  0xce   :  { %v160_v52 = vpop.f32.mrf.mxu0 }
  0xcf   :  { %v2193_v55 = vadd.f32 %v160_v52, %v40_v49 }
  0xd0   :  { %v162_v54 = vpop.f32.mrf.mxu0 }
  0xd1   :  { %v2195_v56 = vadd.f32 %v162_v54, %v44_v51 }
  0xd2   :  { %v166_v58 = vpop.f32.mrf.mxu0  ;;  %v318_v60 = vpop.f32.mrf.mxu1 }
  0xd3   :  { %v176_v59 = vcombine.high %v2193_v55, %v2195_v56  ;;  %v319_v62 = vadd.f32 %v318_v60, %v2191_v53  ;;  %v2202_v63 = vadd.f32 %v166_v58, %v40_v49  ;;  %v175_v12 = vcombine.low %v2193_v55, %v2195_v56 }
  0xd4   :  { %v168_v61 = vpop.f32.mrf.mxu0  ;;  %v320_v5 = vpop.f32.mrf.mxu1 }
  0xd5   :  { %v2204_v0 = vadd.f32 %v168_v61, %v44_v51  ;;  %v321_v6 = vadd.f32 %v320_v5, %v2197_v57  ;;  %v337_v8 = vrot.slane %v319_v62, %v2056_v19  ;;  %v2218_v15 = vrot.slane %v175_v12, %v2056_v19 }
  0xd7   :  { %v193_v9 = vcombine.low %v2202_v63, %v2204_v0  ;;  %338 = vrot.lane.b32.xlu0 %v337_v8, %s1956_s3  ;;  %v371_v11 = vrot.slane %v321_v6, %v2056_v19  ;;  %v194_v14 = vcombine.high %v2202_v63, %v2204_v0  ;;  %v323_v21 = vadd.f32 %v319_v62, %v2218_v15 }
  0xd8   :  { %v2346_v63 = vrot.slane %v176_v59, %v2056_v19 }
  0xd9   :  { %v2221_v17 = vrot.slane %v194_v14, %v2056_v19  ;;  %v1761_v22 = vmul.f32 -1.442695, %v323_v21 }
  0xdb   :  { %372 = vrot.lane.b32.xlu0 %v371_v11, %s1956_s3  ;;  %v2225_v18 = vcombine.high %v2221_v17, %v2221_v17  ;;  %1811 = vpow2.f32 %v1761_v22 }
  0xdd   :  { %v348_v23 = vadd.f32 %v319_v62, %v2225_v18  ;;  %v355_v48 = vrot.slane %v2225_v18, 2 }
  0xdf   :  { %v1762_v25 = vmul.f32 -1.442695, %v348_v23  ;;  %v357_v49 = vadd.f32 %v355_v48, %v321_v6 }
  0xe1   :  { %1813 = vpow2.f32 %v1762_v25  ;;  %v1763_v50 = vmul.f32 -1.442695, %v357_v49 }
  0xe8   :  { %v1812_v27 = vpop.eup %1811 }
  0xe9   :  { %v327_v28 = vadd.f32 1.0, %v1812_v27 }
  0xeb   :  { %1815 = vrcp.f32 %v327_v28 }
  0xee   :  { %v1814_v29 = vpop.eup %1813 }
  0xef   :  { %v352_v30 = vadd.f32 1.0, %v1814_v29 }
  0xf1   :  { %1817 = vrcp.f32 %v352_v30 }
  0xf8   :  { %v1816_v31 = vpop.eup %1815 }
  0xf9   :  { %v386_v62 = vsub.f32 1.0, %v1816_v31 }
  0xfe   :  { %v1818_v36 = vpop.eup %1817 }
 0x149   :  { %v339_v33 = vpop.permute.xlu0 %338 }
 0x14a   :  { %v341_v34 = vmul.f32 %v1816_v31, %v339_v33 }
 0x14c   :  { %343 = vrot.lane.b32.xlu1 %v341_v34, %s1956_s3 }
 0x14d   :  { %v373_v37 = vpop.permute.xlu0 %372 }
 0x14e   :  { %v375_v39 = vmul.f32 %v1818_v36, %v373_v37 }
 0x150   :  { %381 = vrot.lane.b32.xlu0 %v375_v39, %s1957_s5  ;;  %376 = vrot.lane.b32.xlu1 %v2225_v18, %s1958_s7 }
 0x154   :  { %399 = vrot.lane.b32.xlu0 %v398_v40, %s1957_s5 }
 0x1be   :  { %v344_v43 = vpop.permute.xlu1 %343 }
 0x1bf   :  { %v346_v46 = vadd.f32 %v344_v43, %v2218_v15 }
 0x1c1   :  { %1819 = vtanh.f32 %v346_v46  ;;  %v2281_v46 = vcombine.high %v2218_v15, %v2218_v15 }
 0x1c2   :  { %1821 = vpow2.f32 %v1763_v50  ;;  %v377_v51 = vpop.permute.xlu1 %376  ;;  %v382_v58 = vpop.permute.xlu0 %381 }
 0x1c3   :  { %v378_v54 = vrot.slane %v377_v51, 2 }
 0x1c5   :  { %v384_v60 = vadd.f32 %v382_v58, %v378_v54 }
 0x1c6   :  { %v400_v61 = vpop.permute.xlu0 %399 }
 0x1c7   :  { %v402_v11 = vmul.f32 %v1816_v31, %v400_v61 }
 0x1ce   :  { %v1820_v47 = vpop.eup %1819 }
 0x1cf   :  { %388 = vrot.lane.b32.xlu1 %v1820_v47, %s1958_s7  ;;  %v1822_v52 = vpop.eup %1821 }
 0x1d0   :  { %v361_v45 = vadd.f32 1.0, %v1822_v52 }
 0x1d2   :  { %1823 = vrcp.f32 %v361_v45 }
 0x1d3   :  { %406 = vrot.lane.b32.xlu1 %v398_v40, %s1958_s7  ;;  %1825 = vtanh.f32 %v384_v60 }
 0x1df   :  { %v1824_v5 = vpop.eup %1823 }
 0x1e0   :  { %v1826_v14 = vpop.eup %1825  ;;  %v404_v22 = vsub.f32 1.0, %v1824_v5 }
 0x1e2   :  { %v405_v23 = vmul.f32 %v1826_v14, %v404_v22  ;;  %v546_v22 = vrot.slane %v2221_v17, 2 }
 0x241   :  { %v389_v8 = vpop.permute.xlu1 %388 }
 0x242   :  { %v391_v12 = vmul.f32 %v389_v8, %v386_v62 }
 0x244   :  { %v403_v21 = vadd.f32 %v402_v11, %v391_v12 }
 0x245   :  { %v407_v6 = vpop.permute.xlu1 %406 }
 0x246   :  { %v409_v25 = vmul.f32 %v1824_v5, %v407_v6  ;;  %v418_v27 = vrot.slane %v403_v21, %v2056_v19 }
 0x248   :  { %v410_v28 = vadd.f32 %v409_v25, %v405_v23  ;;  %419 = vrot.lane.b32.xlu0 %v418_v27, %s1958_s7 }
 0x24a   :  { %v429_v29 = vrot.slane %v410_v28, %v2056_v19 }
 0x24c   :  { %430 = vrot.lane.b32.xlu1 %v429_v29, %s1957_s5 }
 0x2ba   :  { %v420_v30 = vpop.permute.xlu0 %419 }
 0x2bb   :  { %436 = vst.msk [vmem:[%s2623_s6] sm:$0x3] %vm435_vm2, %v420_v30 }
 0x2be   :  { %v431_v31 = vpop.permute.xlu1 %430 }
 0x2bf   :  { %v434_v33 = vsel %vm433_vm3, %v420_v30, %v431_v31  ;;  %1764 = vst.msk [vmem:[%s2623_s6 + $0xe] sm:$0x3] %vm438_vm4, %v431_v31 }
 0x2c0   :  { %1765 = vmatmul.mubr.msk.f32.vlgmr.msra.gmra.mxu0 %vm248_vm1, %v434_v33  ;;  %v589_v11 = vrot.slane %v434_v33, %v2056_v19 }
 0x2c1   :  { %838 = vmatpush1.msra.mxu0 %v2002_v2  ;;  %885 = vmatprep.mubr.f32.mxu0 %v1954_v4 }
 0x2c2   :  { %839 = vmatprep.subr.mxu0 %v2007_v3 }
 0x2c3   :  { %840 = vmatpush1.msra.mxu0 %v2015_v7 }
 0x2c4   :  { %841 = vmatprep.subr.mxu0 %v2026_v10 }
 0x2c5   :  { %842 = vmatpush1.msra.mxu0 %v2035_v13 }
 0x2c6   :  { %843 = vmatprep.subr.mxu0 %v2047_v16 }
 0x2c7   :  { %844 = vmatpush1.msra.mxu0 %v2062_v20 }
 0x2c8   :  { %845 = vmatprep.subr.mxu0 %v2074_v24 }
 0x2c9   :  { %846 = vmatpush1.msra.mxu0 %v2079_v26 }
 0x2ca   :  { %847 = vmatprep.subr.mxu0 %v2098_v32 }
 0x2cb   :  { %848 = vmatpush1.msra.mxu0 %v2107_v35 }
 0x2cc   :  { %849 = vmatprep.subr.mxu0 %v2113_v38 }
 0x2cd   :  { %850 = vmatpush1.msra.mxu0 %v2121_v41 }
 0x2ce   :  { %851 = vmatprep.subr.mxu0 %v2128_v42 }
 0x2cf   :  { %852 = vmatpush1.msra.mxu0 %v2135_v44 }
 0x2d0   :  { %1213 = vmatprep.subr.mxu0 %v1997_v1 }
 0x380   :  { %v509_v34 = vpop.f32.mrf.mxu0 }
 0x381   :  { %v510_v36 = vadd.f32 %v509_v34, %v2191_v53 }
 0x382   :  { %v511_v37 = vpop.f32.mrf.mxu0 }
 0x383   :  { %v512_v39 = vadd.f32 %v511_v37, %v2197_v57  ;;  %v528_v40 = vrot.slane %v510_v36, %v2056_v19  ;;  %v514_v47 = vadd.f32 %v510_v36, %v2281_v46  ;;  %v539_v49 = vadd.f32 %v510_v36, %v2221_v17 }
 0x385   :  { %v562_v43 = vrot.slane %v512_v39, %v2056_v19  ;;  %529 = vrot.lane.b32.xlu0 %v528_v40, %s1956_s3  ;;  %v1766_v48 = vmul.f32 -1.442695, %v514_v47  ;;  %v1767_v50 = vmul.f32 -1.442695, %v539_v49  ;;  %v548_v6 = vadd.f32 %v546_v22, %v512_v39 }
 0x387   :  { %563 = vrot.lane.b32.xlu1 %v562_v43, %s1956_s3  ;;  %1827 = vpow2.f32 %v1766_v48  ;;  %v1768_v23 = vmul.f32 -1.442695, %v548_v6 }
 0x388   :  { %1829 = vpow2.f32 %v1767_v50 }
 0x38b   :  { %567 = vrot.lane.b32.xlu1 %v2221_v17, %s1958_s7 }
 0x394   :  { %v1828_v51 = vpop.eup %1827 }
 0x395   :  { %v518_v52 = vadd.f32 1.0, %v1828_v51  ;;  %v1830_v54 = vpop.eup %1829 }
 0x396   :  { %v543_v45 = vadd.f32 1.0, %v1830_v54 }
 0x397   :  { %1831 = vrcp.f32 %v518_v52 }
 0x398   :  { %1833 = vrcp.f32 %v543_v45 }
 0x3a4   :  { %v1832_v58 = vpop.eup %1831 }
 0x3a5   :  { %v1834_v5 = vpop.eup %1833  ;;  %v577_v34 = vsub.f32 1.0, %v1832_v58 }
 0x3f7   :  { %v530_v60 = vpop.permute.xlu0 %529 }
 0x3f8   :  { %v532_v61 = vmul.f32 %v1832_v58, %v530_v60 }
 0x3f9   :  { %v564_v62 = vpop.permute.xlu1 %563 }
 0x3fa   :  { %534 = vrot.lane.b32.xlu0 %v532_v61, %s1956_s3  ;;  %v566_v8 = vmul.f32 %v1834_v5, %v564_v62 }
 0x3fd   :  { %v568_v27 = vpop.permute.xlu1 %567 }
 0x3fe   :  { %572 = vrot.lane.b32.xlu0 %v566_v8, %s1957_s5  ;;  %v569_v30 = vrot.slane %v568_v27, 2 }
 0x402   :  { %590 = vrot.lane.b32.xlu0 %v589_v11, %s1957_s5 }
 0x46c   :  { %v535_v12 = vpop.permute.xlu0 %534 }
 0x46d   :  { %v537_v14 = vadd.f32 %v535_v12, %v2281_v46 }
 0x46f   :  { %1835 = vtanh.f32 %v537_v14  ;;  %v2331_v14 = vrot.slane %v193_v9, %v2056_v19 }
 0x470   :  { %1837 = vpow2.f32 %v1768_v23  ;;  %v573_v28 = vpop.permute.xlu0 %572 }
 0x471   :  { %v575_v31 = vadd.f32 %v573_v28, %v569_v30  ;;  %v2338_v22 = vcombine.high %v2331_v14, %v2331_v14 }
 0x474   :  { %v591_v33 = vpop.permute.xlu0 %590 }
 0x475   :  { %v593_v40 = vmul.f32 %v1832_v58, %v591_v33 }
 0x47c   :  { %v1836_v21 = vpop.eup %1835 }
 0x47d   :  { %579 = vrot.lane.b32.xlu1 %v1836_v21, %s1958_s7  ;;  %v1838_v25 = vpop.eup %1837 }
 0x47e   :  { %v552_v29 = vadd.f32 1.0, %v1838_v25 }
 0x480   :  { %1839 = vrcp.f32 %v552_v29 }
 0x481   :  { %597 = vrot.lane.b32.xlu1 %v589_v11, %s1958_s7  ;;  %1841 = vtanh.f32 %v575_v31 }
 0x48d   :  { %v1840_v36 = vpop.eup %1839 }
 0x48e   :  { %v1842_v47 = vpop.eup %1841  ;;  %v595_v49 = vsub.f32 1.0, %v1840_v36 }
 0x490   :  { %v596_v50 = vmul.f32 %v1842_v47, %v595_v49 }
 0x4ef   :  { %v580_v37 = vpop.permute.xlu1 %579 }
 0x4f0   :  { %v582_v43 = vmul.f32 %v580_v37, %v577_v34 }
 0x4f2   :  { %v594_v48 = vadd.f32 %v593_v40, %v582_v43  ;;  %v735_v43 = vrot.slane %v2338_v22, 2 }
 0x4f3   :  { %v598_v39 = vpop.permute.xlu1 %597 }
 0x4f4   :  { %v600_v51 = vmul.f32 %v1840_v36, %v598_v39  ;;  %v609_v52 = vrot.slane %v594_v48, %v2056_v19 }
 0x4f6   :  { %v601_v54 = vadd.f32 %v600_v51, %v596_v50  ;;  %610 = vrot.lane.b32.xlu0 %v609_v52, %s1958_s7 }
 0x4f8   :  { %v620_v45 = vrot.slane %v601_v54, %v2056_v19 }
 0x4fa   :  { %621 = vrot.lane.b32.xlu1 %v620_v45, %s1957_s5 }
 0x568   :  { %v611_v60 = vpop.permute.xlu0 %610 }
 0x569   :  { %1769 = vst.msk [vmem:[%s2623_s6 + $0x2] sm:$0x3] %vm435_vm2, %v611_v60 }
 0x56c   :  { %v622_v58 = vpop.permute.xlu1 %621 }
 0x56d   :  { %v624_v61 = vsel %vm433_vm3, %v611_v60, %v622_v58  ;;  %1770 = vst.msk [vmem:[%s2623_s6 + $0xc] sm:$0x3] %vm438_vm4, %v622_v58 }
 0x56e   :  { %1771 = vmatmul.mubr.msk.f32.vlgmr.msra.gmra.mxu1 %vm248_vm1, %v624_v61  ;;  %v778_v34 = vrot.slane %v624_v61, %v2056_v19 }
 0x56f   :  { %1027 = vmatpush1.msra.mxu1 %v2002_v2  ;;  %1074 = vmatprep.mubr.f32.mxu1 %v1954_v4 }
 0x570   :  { %1028 = vmatprep.subr.mxu1 %v2007_v3 }
 0x571   :  { %1029 = vmatpush1.msra.mxu1 %v2015_v7 }
 0x572   :  { %1030 = vmatprep.subr.mxu1 %v2026_v10 }
 0x573   :  { %1031 = vmatpush1.msra.mxu1 %v2035_v13 }
 0x574   :  { %1032 = vmatprep.subr.mxu1 %v2047_v16 }
 0x575   :  { %1033 = vmatpush1.msra.mxu1 %v2062_v20 }
 0x576   :  { %1034 = vmatprep.subr.mxu1 %v2074_v24 }
 0x577   :  { %1035 = vmatpush1.msra.mxu1 %v2079_v26 }
 0x578   :  { %1036 = vmatprep.subr.mxu1 %v2098_v32 }
 0x579   :  { %1037 = vmatpush1.msra.mxu1 %v2107_v35 }
 0x57a   :  { %1038 = vmatprep.subr.mxu1 %v2113_v38 }
 0x57b   :  { %1039 = vmatpush1.msra.mxu1 %v2121_v41 }
 0x57c   :  { %1040 = vmatprep.subr.mxu1 %v2128_v42 }
 0x57d   :  { %1041 = vmatpush1.msra.mxu1 %v2135_v44 }
 0x57e   :  { %1400 = vmatprep.subr.mxu1 %v1997_v1 }
 0x62e   :  { %v698_v62 = vpop.f32.mrf.mxu1 }
 0x62f   :  { %v699_v5 = vadd.f32 %v698_v62, %v2191_v53 }
 0x630   :  { %v700_v8 = vpop.f32.mrf.mxu1 }
 0x631   :  { %v701_v11 = vadd.f32 %v700_v8, %v2197_v57  ;;  %v717_v12 = vrot.slane %v699_v5, %v2056_v19  ;;  %v703_v0 = vadd.f32 %v699_v5, %v2346_v63  ;;  %v728_v6 = vadd.f32 %v699_v5, %v2338_v22 }
 0x633   :  { %v751_v21 = vrot.slane %v701_v11, %v2056_v19  ;;  %718 = vrot.lane.b32.xlu0 %v717_v12, %s1956_s3  ;;  %v1772_v9 = vmul.f32 -1.442695, %v703_v0  ;;  %v1773_v23 = vmul.f32 -1.442695, %v728_v6  ;;  %v737_v47 = vadd.f32 %v735_v43, %v701_v11 }
 0x635   :  { %752 = vrot.lane.b32.xlu1 %v751_v21, %s1956_s3  ;;  %1843 = vpow2.f32 %v1772_v9  ;;  %v1774_v48 = vmul.f32 -1.442695, %v737_v47 }
 0x636   :  { %1845 = vpow2.f32 %v1773_v23 }
 0x639   :  { %756 = vrot.lane.b32.xlu1 %v2338_v22, %s1958_s7 }
 0x642   :  { %v1844_v25 = vpop.eup %1843 }
 0x643   :  { %v707_v27 = vadd.f32 1.0, %v1844_v25  ;;  %v1846_v28 = vpop.eup %1845 }
 0x644   :  { %v732_v29 = vadd.f32 1.0, %v1846_v28 }
 0x645   :  { %1847 = vrcp.f32 %v707_v27 }
 0x646   :  { %1849 = vrcp.f32 %v732_v29 }
 0x652   :  { %v1848_v30 = vpop.eup %1847 }
 0x653   :  { %v1850_v56 = vpop.eup %1849  ;;  %v766_v60 = vsub.f32 1.0, %v1848_v30 }
 0x6a5   :  { %v719_v31 = vpop.permute.xlu0 %718 }
 0x6a6   :  { %v721_v33 = vmul.f32 %v1848_v30, %v719_v31 }
 0x6a7   :  { %v753_v55 = vpop.permute.xlu1 %752 }
 0x6a8   :  { %723 = vrot.lane.b32.xlu0 %v721_v33, %s1956_s3  ;;  %v755_v59 = vmul.f32 %v1850_v56, %v753_v55 }
 0x6ab   :  { %v757_v39 = vpop.permute.xlu1 %756 }
 0x6ac   :  { %761 = vrot.lane.b32.xlu0 %v755_v59, %s1957_s5  ;;  %v758_v52 = vrot.slane %v757_v39, 2 }
 0x6b0   :  { %779 = vrot.lane.b32.xlu0 %v778_v34, %s1957_s5 }
 0x71a   :  { %v724_v36 = vpop.permute.xlu0 %723 }
 0x71b   :  { %v726_v37 = vadd.f32 %v724_v36, %v2346_v63 }
 0x71d   :  { %1851 = vtanh.f32 %v726_v37 }
 0x71e   :  { %1853 = vpow2.f32 %v1774_v48  ;;  %v762_v50 = vpop.permute.xlu0 %761 }
 0x71f   :  { %v764_v54 = vadd.f32 %v762_v50, %v758_v52 }
 0x722   :  { %v780_v45 = vpop.permute.xlu0 %779 }
 0x723   :  { %v782_v62 = vmul.f32 %v1848_v30, %v780_v45 }
 0x72a   :  { %v1852_v40 = vpop.eup %1851 }
 0x72b   :  { %768 = vrot.lane.b32.xlu1 %v1852_v40, %s1958_s7  ;;  %v1854_v49 = vpop.eup %1853 }
 0x72c   :  { %v741_v51 = vadd.f32 1.0, %v1854_v49 }
 0x72e   :  { %1855 = vrcp.f32 %v741_v51 }
 0x72f   :  { %786 = vrot.lane.b32.xlu1 %v778_v34, %s1958_s7  ;;  %1857 = vtanh.f32 %v764_v54 }
 0x73b   :  { %v1856_v58 = vpop.eup %1855 }
 0x73c   :  { %v1858_v8 = vpop.eup %1857  ;;  %v784_v21 = vsub.f32 1.0, %v1856_v58 }
 0x73e   :  { %v785_v0 = vmul.f32 %v1858_v8, %v784_v21 }
 0x79d   :  { %v769_v61 = vpop.permute.xlu1 %768 }
 0x79e   :  { %v771_v5 = vmul.f32 %v769_v61, %v766_v60 }
 0x7a0   :  { %v783_v12 = vadd.f32 %v782_v62, %v771_v5  ;;  %v924_v5 = vrot.slane %v2331_v14, 2 }
 0x7a1   :  { %v787_v11 = vpop.permute.xlu1 %786 }
 0x7a2   :  { %v789_v9 = vmul.f32 %v1856_v58, %v787_v11  ;;  %v798_v6 = vrot.slane %v783_v12, %v2056_v19 }
 0x7a4   :  { %v790_v23 = vadd.f32 %v789_v9, %v785_v0  ;;  %799 = vrot.lane.b32.xlu0 %v798_v6, %s1958_s7 }
 0x7a6   :  { %v809_v25 = vrot.slane %v790_v23, %v2056_v19 }
 0x7a8   :  { %810 = vrot.lane.b32.xlu1 %v809_v25, %s1957_s5 }
 0x816   :  { %v800_v27 = vpop.permute.xlu0 %799 }
 0x817   :  { %1775 = vst.msk [vmem:[%s2623_s6 + $0x4] sm:$0x3] %vm435_vm2, %v800_v27 }
 0x81a   :  { %v811_v28 = vpop.permute.xlu1 %810 }
 0x81b   :  { %v813_v29 = vsel %vm433_vm3, %v800_v27, %v811_v28  ;;  %1776 = vst.msk [vmem:[%s2623_s6 + $0xa] sm:$0x3] %vm438_vm4, %v811_v28 }
 0x81c   :  { %1777 = vmatmul.mubr.msk.f32.vlgmr.msra.gmra.mxu0 %vm248_vm1, %v813_v29  ;;  %v967_v60 = vrot.slane %v813_v29, %v2056_v19 }
 0x81d   :  { %1214 = vmatpush1.msra.mxu0 %v2002_v2  ;;  %1261 = vmatprep.mubr.f32.mxu0 %v1954_v4 }
 0x81e   :  { %1215 = vmatprep.subr.mxu0 %v2007_v3 }
 0x81f   :  { %1216 = vmatpush1.msra.mxu0 %v2015_v7 }
 0x820   :  { %1217 = vmatprep.subr.mxu0 %v2026_v10 }
 0x821   :  { %1218 = vmatpush1.msra.mxu0 %v2035_v13 }
 0x822   :  { %1219 = vmatprep.subr.mxu0 %v2047_v16 }
 0x823   :  { %1220 = vmatpush1.msra.mxu0 %v2062_v20 }
 0x824   :  { %1221 = vmatprep.subr.mxu0 %v2074_v24 }
 0x825   :  { %1222 = vmatpush1.msra.mxu0 %v2079_v26 }
 0x826   :  { %1223 = vmatprep.subr.mxu0 %v2098_v32 }
 0x827   :  { %1224 = vmatpush1.msra.mxu0 %v2107_v35 }
 0x828   :  { %1225 = vmatprep.subr.mxu0 %v2113_v38 }
 0x829   :  { %1226 = vmatpush1.msra.mxu0 %v2121_v41 }
 0x82a   :  { %1227 = vmatprep.subr.mxu0 %v2128_v42 }
 0x82b   :  { %1228 = vmatpush1.msra.mxu0 %v2135_v44 }
 0x82c   :  { %1587 = vmatprep.subr.mxu0 %v1997_v1  ;;  %v2399_v1 = vcombine.high %v2346_v63, %v2346_v63 }
 0x8dc   :  { %v887_v30 = vpop.f32.mrf.mxu0 }
 0x8dd   :  { %v888_v31 = vadd.f32 %v887_v30, %v2191_v53 }
 0x8de   :  { %v889_v33 = vpop.f32.mrf.mxu0 }
 0x8df   :  { %v890_v55 = vadd.f32 %v889_v33, %v2197_v57  ;;  %v906_v56 = vrot.slane %v888_v31, %v2056_v19  ;;  %v892_v34 = vadd.f32 %v888_v31, %v2399_v1  ;;  %v917_v37 = vadd.f32 %v888_v31, %v2331_v14 }
 0x8e1   :  { %v940_v59 = vrot.slane %v890_v55, %v2056_v19  ;;  %907 = vrot.lane.b32.xlu0 %v906_v56, %s1956_s3  ;;  %v1778_v36 = vmul.f32 -1.442695, %v892_v34  ;;  %v1779_v40 = vmul.f32 -1.442695, %v917_v37  ;;  %v926_v8 = vadd.f32 %v924_v5, %v890_v55 }
 0x8e3   :  { %941 = vrot.lane.b32.xlu1 %v940_v59, %s1956_s3  ;;  %1859 = vpow2.f32 %v1778_v36  ;;  %v1780_v12 = vmul.f32 -1.442695, %v926_v8 }
 0x8e4   :  { %1861 = vpow2.f32 %v1779_v40 }
 0x8e7   :  { %945 = vrot.lane.b32.xlu1 %v2331_v14, %s1958_s7 }
 0x8f0   :  { %v1860_v43 = vpop.eup %1859 }
 0x8f1   :  { %v896_v47 = vadd.f32 1.0, %v1860_v43  ;;  %v1862_v48 = vpop.eup %1861 }
 0x8f2   :  { %v921_v49 = vadd.f32 1.0, %v1862_v48 }
 0x8f3   :  { %1863 = vrcp.f32 %v896_v47 }
 0x8f4   :  { %1865 = vrcp.f32 %v921_v49 }
 0x900   :  { %v1864_v39 = vpop.eup %1863 }
 0x901   :  { %v1866_v54 = vpop.eup %1865  ;;  %v955_v27 = vsub.f32 1.0, %v1864_v39 }
 0x953   :  { %v908_v50 = vpop.permute.xlu0 %907 }
 0x954   :  { %v910_v51 = vmul.f32 %v1864_v39, %v908_v50 }
 0x955   :  { %v942_v52 = vpop.permute.xlu1 %941 }
 0x956   :  { %912 = vrot.lane.b32.xlu0 %v910_v51, %s1956_s3  ;;  %v944_v45 = vmul.f32 %v1866_v54, %v942_v52 }
 0x959   :  { %v946_v11 = vpop.permute.xlu1 %945 }
 0x95a   :  { %950 = vrot.lane.b32.xlu0 %v944_v45, %s1957_s5  ;;  %v947_v6 = vrot.slane %v946_v11, 2 }
 0x95e   :  { %968 = vrot.lane.b32.xlu0 %v967_v60, %s1957_s5 }
 0x9c8   :  { %v913_v58 = vpop.permute.xlu0 %912 }
 0x9c9   :  { %v915_v61 = vadd.f32 %v913_v58, %v2399_v1 }
 0x9cb   :  { %1867 = vtanh.f32 %v915_v61 }
 0x9cc   :  { %1869 = vpow2.f32 %v1780_v12  ;;  %v951_v0 = vpop.permute.xlu0 %950 }
 0x9cd   :  { %v953_v23 = vadd.f32 %v951_v0, %v947_v6 }
 0x9d0   :  { %v969_v25 = vpop.permute.xlu0 %968 }
 0x9d1   :  { %v971_v30 = vmul.f32 %v1864_v39, %v969_v25 }
 0x9d8   :  { %v1868_v62 = vpop.eup %1867 }
 0x9d9   :  { %957 = vrot.lane.b32.xlu1 %v1868_v62, %s1958_s7  ;;  %v1870_v21 = vpop.eup %1869  ;;  %v1113_v62 = vrot.slane %v2399_v1, 2 }
 0x9da   :  { %v930_v9 = vadd.f32 1.0, %v1870_v21 }
 0x9dc   :  { %1871 = vrcp.f32 %v930_v9 }
 0x9dd   :  { %975 = vrot.lane.b32.xlu1 %v967_v60, %s1958_s7  ;;  %1873 = vtanh.f32 %v953_v23 }
 0x9e9   :  { %v1872_v28 = vpop.eup %1871 }
 0x9ea   :  { %v1874_v33 = vpop.eup %1873  ;;  %v973_v59 = vsub.f32 1.0, %v1872_v28 }
 0x9ec   :  { %v974_v34 = vmul.f32 %v1874_v33, %v973_v59 }
 0xa4b   :  { %v958_v29 = vpop.permute.xlu1 %957 }
 0xa4c   :  { %v960_v31 = vmul.f32 %v958_v29, %v955_v27 }
 0xa4e   :  { %v972_v56 = vadd.f32 %v971_v30, %v960_v31 }
 0xa4f   :  { %v976_v55 = vpop.permute.xlu1 %975 }
 0xa50   :  { %v978_v36 = vmul.f32 %v1872_v28, %v976_v55  ;;  %v987_v37 = vrot.slane %v972_v56, %v2056_v19 }
 0xa52   :  { %v979_v40 = vadd.f32 %v978_v36, %v974_v34  ;;  %988 = vrot.lane.b32.xlu0 %v987_v37, %s1958_s7 }
 0xa54   :  { %v998_v43 = vrot.slane %v979_v40, %v2056_v19 }
 0xa56   :  { %999 = vrot.lane.b32.xlu1 %v998_v43, %s1957_s5 }
 0xac4   :  { %v989_v47 = vpop.permute.xlu0 %988 }
 0xac5   :  { %1781 = vst.msk [vmem:[%s2623_s6 + $0x6] sm:$0x3] %vm435_vm2, %v989_v47 }
 0xac8   :  { %v1000_v48 = vpop.permute.xlu1 %999 }
 0xac9   :  { %v1002_v49 = vsel %vm433_vm3, %v989_v47, %v1000_v48  ;;  %1782 = vst.msk [vmem:[%s2623_s6 + $0x8] sm:$0x3] %vm438_vm4, %v1000_v48  ;;  %v1939_v47 = vld [vmem:[%s2617_s4 + $0x70] sm:$0xff]  ;;  %v1940_v48 = vld [vmem:[%s2617_s4 + $0x68] sm:$0xff] }
 0xaca   :  { %1783 = vmatmul.mubr.msk.f32.vlgmr.msra.gmra.mxu1 %vm248_vm1, %v1002_v49  ;;  %v1156_v45 = vrot.slane %v1002_v49, %v2056_v19  ;;  %v1941_v49 = vld [vmem:[%s2617_s4 + $0x60] sm:$0xff] }
 0xacb   :  { %1401 = vmatpush1.msra.mxu1 %v2002_v2  ;;  %1448 = vmatprep.mubr.f32.mxu1 %v1954_v4 }
 0xacc   :  { %1402 = vmatprep.subr.mxu1 %v2007_v3 }
 0xacd   :  { %1403 = vmatpush1.msra.mxu1 %v2015_v7 }
 0xace   :  { %1404 = vmatprep.subr.mxu1 %v2026_v10 }
 0xacf   :  { %1405 = vmatpush1.msra.mxu1 %v2035_v13 }
 0xad0   :  { %1406 = vmatprep.subr.mxu1 %v2047_v16 }
 0xad1   :  { %1407 = vmatpush1.msra.mxu1 %v2062_v20 }
 0xad2   :  { %1408 = vmatprep.subr.mxu1 %v2074_v24 }
 0xad3   :  { %1409 = vmatpush1.msra.mxu1 %v2079_v26 }
 0xad4   :  { %1410 = vmatprep.subr.mxu1 %v2098_v32 }
 0xad5   :  { %1411 = vmatpush1.msra.mxu1 %v2107_v35 }
 0xad6   :  { %1412 = vmatprep.subr.mxu1 %v2113_v38 }
 0xad7   :  { %1413 = vmatpush1.msra.mxu1 %v2121_v41 }
 0xad8   :  { %1414 = vmatprep.subr.mxu1 %v2128_v42 }
 0xad9   :  { %1415 = vmatpush1.msra.mxu1 %v2135_v44 }
 0xb8a   :  { %v1076_v2 = vpop.f32.mrf.mxu1 }
 0xb8b   :  { %v1077_v3 = vadd.f32 %v1076_v2, %v2191_v53  ;;  %v1942_v2 = vld [vmem:[%s2617_s4 + $0x58] sm:$0xff] }
 0xb8c   :  { %v1078_v7 = vpop.f32.mrf.mxu1 }
 0xb8d   :  { %v1079_v10 = vadd.f32 %v1078_v7, %v2197_v57  ;;  %v1095_v13 = vrot.slane %v1077_v3, %v2056_v19  ;;  %v1081_v20 = vadd.f32 %v1077_v3, %v2331_v14  ;;  %v1106_v26 = vadd.f32 %v1077_v3, %v2399_v1  ;;  %v1943_v3 = vld [vmem:[%s2617_s4 + $0x50] sm:$0xff]  ;;  %v1945_v7 = vld [vmem:[%s2617_s4 + $0x40] sm:$0xff] }
 0xb8f   :  { %v1129_v16 = vrot.slane %v1079_v10, %v2056_v19  ;;  %1096 = vrot.lane.b32.xlu0 %v1095_v13, %s1956_s3  ;;  %v1784_v24 = vmul.f32 -1.442695, %v1081_v20  ;;  %v1785_v32 = vmul.f32 -1.442695, %v1106_v26  ;;  %v1115_v5 = vadd.f32 %v1113_v62, %v1079_v10  ;;  %v1946_v10 = vld [vmem:[%s2617_s4 + $0x38] sm:$0xff]  ;;  %v1947_v13 = vld [vmem:[%s2617_s4 + $0x30] sm:$0xff] }
 0xb90   :  { %v1949_v20 = vld [vmem:[%s2617_s4 + $0x20] sm:$0xff]  ;;  %v1951_v26 = vld [vmem:[%s2617_s4 + $0x10] sm:$0xff] }
 0xb91   :  { %1130 = vrot.lane.b32.xlu1 %v1129_v16, %s1956_s3  ;;  %1875 = vpow2.f32 %v1784_v24  ;;  %v1786_v8 = vmul.f32 -1.442695, %v1115_v5  ;;  %v1948_v16 = vld [vmem:[%s2617_s4 + $0x28] sm:$0xff]  ;;  %v1950_v24 = vld [vmem:[%s2617_s4 + $0x18] sm:$0xff] }
 0xb92   :  { %1877 = vpow2.f32 %v1785_v32  ;;  %v1952_v32 = vld [vmem:[%s2617_s4 + $0x8] sm:$0xff] }
 0xb95   :  { %1134 = vrot.lane.b32.xlu1 %v2399_v1, %s1958_s7 }
 0xb9e   :  { %v1876_v35 = vpop.eup %1875 }
 0xb9f   :  { %v1085_v38 = vadd.f32 1.0, %v1876_v35  ;;  %v1878_v41 = vpop.eup %1877  ;;  %v1953_v35 = vld [vmem:[%s2617_s4] sm:$0xff] }
 0xba0   :  { %v1110_v42 = vadd.f32 1.0, %v1878_v41 }
 0xba1   :  { %1879 = vrcp.f32 %v1085_v38 }
 0xba2   :  { %1881 = vrcp.f32 %v1110_v42 }
 0xbae   :  { %v1880_v44 = vpop.eup %1879 }
 0xbaf   :  { %v1882_v52 = vpop.eup %1881  ;;  %v1144_v23 = vsub.f32 1.0, %v1880_v44 }
 0xc01   :  { %v1097_v39 = vpop.permute.xlu0 %1096 }
 0xc02   :  { %v1099_v50 = vmul.f32 %v1880_v44, %v1097_v39 }
 0xc03   :  { %v1131_v51 = vpop.permute.xlu1 %1130 }
 0xc04   :  { %1101 = vrot.lane.b32.xlu0 %v1099_v50, %s1956_s3  ;;  %v1133_v54 = vmul.f32 %v1882_v52, %v1131_v51 }
 0xc07   :  { %v1135_v21 = vpop.permute.xlu1 %1134 }
 0xc08   :  { %1139 = vrot.lane.b32.xlu0 %v1133_v54, %s1957_s5  ;;  %v1136_v9 = vrot.slane %v1135_v21, 2 }
 0xc0c   :  { %1157 = vrot.lane.b32.xlu0 %v1156_v45, %s1957_s5 }
 0xc76   :  { %v1102_v60 = vpop.permute.xlu0 %1101 }
 0xc77   :  { %v1104_v58 = vadd.f32 %v1102_v60, %v2331_v14 }
 0xc79   :  { %1883 = vtanh.f32 %v1104_v58 }
 0xc7a   :  { %1885 = vpow2.f32 %v1786_v8  ;;  %v1140_v11 = vpop.permute.xlu0 %1139 }
 0xc7b   :  { %v1142_v6 = vadd.f32 %v1140_v11, %v1136_v9 }
 0xc7e   :  { %v1158_v14 = vpop.permute.xlu0 %1157 }
 0xc7f   :  { %v1160_v28 = vmul.f32 %v1880_v44, %v1158_v14 }
 0xc86   :  { %v1884_v61 = vpop.eup %1883 }
 0xc87   :  { %1146 = vrot.lane.b32.xlu1 %v1884_v61, %s1958_s7  ;;  %v1886_v12 = vpop.eup %1885 }
 0xc88   :  { %v1119_v0 = vadd.f32 1.0, %v1886_v12 }
 0xc8a   :  { %1887 = vrcp.f32 %v1119_v0 }
 0xc8b   :  { %1164 = vrot.lane.b32.xlu1 %v1156_v45, %s1958_s7  ;;  %1889 = vtanh.f32 %v1142_v6 }
 0xc97   :  { %v1888_v25 = vpop.eup %1887 }
 0xc98   :  { %v1890_v30 = vpop.eup %1889  ;;  %v1162_v1 = vsub.f32 1.0, %v1888_v25 }
 0xc9a   :  { %v1163_v56 = vmul.f32 %v1890_v30, %v1162_v1 }
 0xcf9   :  { %v1147_v27 = vpop.permute.xlu1 %1146 }
 0xcfa   :  { %v1149_v29 = vmul.f32 %v1147_v27, %v1144_v23 }
 0xcfc   :  { %v1161_v31 = vadd.f32 %v1160_v28, %v1149_v29 }
 0xcfd   :  { %v1165_v33 = vpop.permute.xlu1 %1164 }
 0xcfe   :  { %v1167_v59 = vmul.f32 %v1888_v25, %v1165_v33  ;;  %v1176_v55 = vrot.slane %v1161_v31, %v2056_v19  ;;  %v1300_v25 = vrot.slane %v2346_v63, 2 }
 0xd00   :  { %v1168_v34 = vadd.f32 %v1167_v59, %v1163_v56  ;;  %1177 = vrot.lane.b32.xlu0 %v1176_v55, %s1958_s7 }
 0xd02   :  { %v1187_v36 = vrot.slane %v1168_v34, %v2056_v19 }
 0xd04   :  { %1188 = vrot.lane.b32.xlu1 %v1187_v36, %s1957_s5 }
 0xd72   :  { %v1178_v37 = vpop.permute.xlu0 %1177 }
 0xd73   :  { %1787 = vst.msk [vmem:[%s2623_s6 + $0x8] sm:$0x3] %vm435_vm2, %v1178_v37 }
 0xd76   :  { %v1189_v40 = vpop.permute.xlu1 %1188 }
 0xd77   :  { %v2468_v43 = vsel %vm433_vm3, %v1178_v37, %v1189_v40  ;;  %1788 = vst.msk [vmem:[%s2623_s6 + $0x6] sm:$0x3] %vm438_vm4, %v1189_v40 }
 0xd78   :  { %1789 = vmatmul.mubr.msk.f32.vlgmr.msra.gmra.mxu0 %vm248_vm1, %v2468_v43  ;;  %v1343_v9 = vrot.slane %v2468_v43, %v2056_v19 }
 0xd79   :  { %1588 = vmatpush1.msra.mxu0 %v1939_v47  ;;  %1635 = vmatprep.mubr.f32.mxu0 %v1954_v4  ;;  %v1944_v4 = vld [vmem:[%s2617_s4 + $0x48] sm:$0xff] }
 0xd7a   :  { %1589 = vmatprep.subr.mxu0 %v1940_v48 }
 0xd7b   :  { %1590 = vmatpush1.msra.mxu0 %v1941_v49 }
 0xd7c   :  { %1591 = vmatprep.subr.mxu0 %v1942_v2 }
 0xd7d   :  { %1592 = vmatpush1.msra.mxu0 %v1943_v3 }
 0xd7e   :  { %1593 = vmatprep.subr.mxu0 %v1944_v4 }
 0xd7f   :  { %1594 = vmatpush1.msra.mxu0 %v1945_v7 }
 0xd80   :  { %1595 = vmatprep.subr.mxu0 %v1946_v10 }
 0xd81   :  { %1596 = vmatpush1.msra.mxu0 %v1947_v13 }
 0xd82   :  { %1597 = vmatprep.subr.mxu0 %v1948_v16 }
 0xd83   :  { %1598 = vmatpush1.msra.mxu0 %v1949_v20 }
 0xd84   :  { %1599 = vmatprep.subr.mxu0 %v1950_v24 }
 0xd85   :  { %1600 = vmatpush1.msra.mxu0 %v1951_v26 }
 0xd86   :  { %1601 = vmatprep.subr.mxu0 %v1952_v32 }
 0xd87   :  { %1602 = vmatpush1.msra.mxu0 %v1953_v35 }
 0xe38   :  { %v1263_v38 = vpop.f32.mrf.mxu0 }
 0xe39   :  { %v1264_v41 = vadd.f32 %v1263_v38, %v2191_v53 }
 0xe3a   :  { %v1265_v42 = vpop.f32.mrf.mxu0 }
 0xe3b   :  { %v1266_v44 = vadd.f32 %v1265_v42, %v2197_v57  ;;  %v1282_v39 = vrot.slane %v1264_v41, %v2056_v19  ;;  %v1268_v51 = vadd.f32 %v1264_v41, %v2338_v22  ;;  %v1293_v54 = vadd.f32 %v1264_v41, %v2346_v63 }
 0xe3d   :  { %v1316_v50 = vrot.slane %v1266_v44, %v2056_v19  ;;  %1283 = vrot.lane.b32.xlu0 %v1282_v39, %s1956_s3  ;;  %v1790_v52 = vmul.f32 -1.442695, %v1268_v51  ;;  %v1791_v45 = vmul.f32 -1.442695, %v1293_v54  ;;  %v1302_v27 = vadd.f32 %v1300_v25, %v1266_v44 }
 0xe3f   :  { %1317 = vrot.lane.b32.xlu1 %v1316_v50, %s1956_s3  ;;  %1891 = vpow2.f32 %v1790_v52  ;;  %v1792_v28 = vmul.f32 -1.442695, %v1302_v27 }
 0xe40   :  { %1893 = vpow2.f32 %v1791_v45 }
 0xe43   :  { %1321 = vrot.lane.b32.xlu1 %v2346_v63, %s1958_s7 }
 0xe4c   :  { %v1892_v60 = vpop.eup %1891 }
 0xe4d   :  { %v1272_v58 = vadd.f32 1.0, %v1892_v60  ;;  %v1894_v61 = vpop.eup %1893 }
 0xe4e   :  { %v1297_v62 = vadd.f32 1.0, %v1894_v61 }
 0xe4f   :  { %1895 = vrcp.f32 %v1272_v58 }
 0xe50   :  { %1897 = vrcp.f32 %v1297_v62 }
 0xe5c   :  { %v1896_v5 = vpop.eup %1895 }
 0xe5d   :  { %v1898_v11 = vpop.eup %1897  ;;  %v1331_v59 = vsub.f32 1.0, %v1896_v5 }
 0xeaf   :  { %v1284_v8 = vpop.permute.xlu0 %1283 }
 0xeb0   :  { %v1286_v12 = vmul.f32 %v1896_v5, %v1284_v8 }
 0xeb1   :  { %v1318_v21 = vpop.permute.xlu1 %1317 }
 0xeb2   :  { %1288 = vrot.lane.b32.xlu0 %v1286_v12, %s1956_s3  ;;  %v1320_v0 = vmul.f32 %v1898_v11, %v1318_v21  ;;  %v1487_v11 = vrot.slane %v2281_v46, 2 }
 0xeb5   :  { %v1322_v30 = vpop.permute.xlu1 %1321 }
 0xeb6   :  { %1326 = vrot.lane.b32.xlu0 %v1320_v0, %s1957_s5  ;;  %v1323_v33 = vrot.slane %v1322_v30, 2 }
 0xeba   :  { %1344 = vrot.lane.b32.xlu0 %v1343_v9, %s1957_s5 }
 0xf24   :  { %v1289_v6 = vpop.permute.xlu0 %1288 }
 0xf25   :  { %v1291_v14 = vadd.f32 %v1289_v6, %v2338_v22 }
 0xf27   :  { %1899 = vtanh.f32 %v1291_v14 }
 0xf28   :  { %1901 = vpow2.f32 %v1792_v28  ;;  %v1327_v31 = vpop.permute.xlu0 %1326 }
 0xf29   :  { %v1329_v56 = vadd.f32 %v1327_v31, %v1323_v33 }
 0xf2c   :  { %v1345_v22 = vpop.permute.xlu0 %1344 }
 0xf2d   :  { %v1347_v36 = vmul.f32 %v1896_v5, %v1345_v22 }
 0xf34   :  { %v1900_v23 = vpop.eup %1899 }
 0xf35   :  { %1333 = vrot.lane.b32.xlu1 %v1900_v23, %s1958_s7  ;;  %v1902_v29 = vpop.eup %1901 }
 0xf36   :  { %v1306_v1 = vadd.f32 1.0, %v1902_v29 }
 0xf38   :  { %1903 = vrcp.f32 %v1306_v1 }
 0xf39   :  { %1351 = vrot.lane.b32.xlu1 %v1343_v9, %s1958_s7  ;;  %1905 = vtanh.f32 %v1329_v56 }
 0xf45   :  { %v1904_v55 = vpop.eup %1903 }
 0xf46   :  { %v1906_v40 = vpop.eup %1905  ;;  %v1349_v63 = vsub.f32 1.0, %v1904_v55 }
 0xf48   :  { %v1350_v48 = vmul.f32 %v1906_v40, %v1349_v63 }
 0xfa7   :  { %v1334_v34 = vpop.permute.xlu1 %1333 }
 0xfa8   :  { %v1336_v37 = vmul.f32 %v1334_v34, %v1331_v59 }
 0xfaa   :  { %v1348_v43 = vadd.f32 %v1347_v36, %v1336_v37 }
 0xfab   :  { %v1352_v47 = vpop.permute.xlu1 %1351 }
 0xfac   :  { %v1354_v49 = vmul.f32 %v1904_v55, %v1352_v47  ;;  %v1363_v2 = vrot.slane %v1348_v43, %v2056_v19 }
 0xfae   :  { %v1355_v3 = vadd.f32 %v1354_v49, %v1350_v48  ;;  %1364 = vrot.lane.b32.xlu0 %v1363_v2, %s1958_s7 }
 0xfb0   :  { %v1374_v4 = vrot.slane %v1355_v3, %v2056_v19 }
 0xfb2   :  { %1375 = vrot.lane.b32.xlu1 %v1374_v4, %s1957_s5 }
0x1020   :  { %v1365_v7 = vpop.permute.xlu0 %1364 }
0x1021   :  { %1793 = vst.msk [vmem:[%s2623_s6 + $0xa] sm:$0x3] %vm435_vm2, %v1365_v7 }
0x1024   :  { %v1376_v10 = vpop.permute.xlu1 %1375 }
0x1025   :  { %v1378_v13 = vsel %vm433_vm3, %v1365_v7, %v1376_v10  ;;  %1794 = vst.msk [vmem:[%s2623_s6 + $0x4] sm:$0x3] %vm438_vm4, %v1376_v10 }
0x1026   :  { %1795 = vmatmul.mubr.msk.f32.vlgmr.msra.gmra.mxu1 %vm248_vm1, %v1378_v13  ;;  %v1530_v5 = vrot.slane %v1378_v13, %v2056_v19 }
0x10e6   :  { %v1450_v16 = vpop.f32.mrf.mxu1 }
0x10e7   :  { %v1451_v20 = vadd.f32 %v1450_v16, %v2191_v53 }
0x10e8   :  { %v1452_v24 = vpop.f32.mrf.mxu1 }
0x10e9   :  { %v1453_v26 = vadd.f32 %v1452_v24, %v2197_v57  ;;  %v1469_v32 = vrot.slane %v1451_v20, %v2056_v19  ;;  %v1455_v38 = vadd.f32 %v1451_v20, %v2221_v17  ;;  %v1480_v42 = vadd.f32 %v1451_v20, %v2281_v46 }
0x10eb   :  { %v1503_v35 = vrot.slane %v1453_v26, %v2056_v19  ;;  %1470 = vrot.lane.b32.xlu0 %v1469_v32, %s1956_s3  ;;  %v1796_v41 = vmul.f32 -1.442695, %v1455_v38  ;;  %v1797_v44 = vmul.f32 -1.442695, %v1480_v42  ;;  %v1489_v0 = vadd.f32 %v1487_v11, %v1453_v26 }
0x10ed   :  { %1504 = vrot.lane.b32.xlu1 %v1503_v35, %s1956_s3  ;;  %1907 = vpow2.f32 %v1796_v41  ;;  %v1798_v9 = vmul.f32 -1.442695, %v1489_v0 }
0x10ee   :  { %1909 = vpow2.f32 %v1797_v44 }
0x10f1   :  { %1508 = vrot.lane.b32.xlu1 %v2281_v46, %s1958_s7 }
0x10fa   :  { %v1908_v39 = vpop.eup %1907 }
0x10fb   :  { %v1459_v50 = vadd.f32 1.0, %v1908_v39  ;;  %v1910_v51 = vpop.eup %1909 }
0x10fc   :  { %v1484_v52 = vadd.f32 1.0, %v1910_v51 }
0x10fd   :  { %1911 = vrcp.f32 %v1459_v50 }
0x10fe   :  { %1913 = vrcp.f32 %v1484_v52 }
0x110a   :  { %v1912_v54 = vpop.eup %1911 }
0x110b   :  { %v1914_v61 = vpop.eup %1913  ;;  %v1518_v29 = vsub.f32 1.0, %v1912_v54 }
0x115d   :  { %v1471_v45 = vpop.permute.xlu0 %1470 }
0x115e   :  { %v1473_v60 = vmul.f32 %v1912_v54, %v1471_v45 }
0x115f   :  { %v1505_v58 = vpop.permute.xlu1 %1504 }
0x1160   :  { %1475 = vrot.lane.b32.xlu0 %v1473_v60, %s1956_s3  ;;  %v1507_v62 = vmul.f32 %v1914_v61, %v1505_v58 }
0x1163   :  { %v1509_v14 = vpop.permute.xlu1 %1508 }
0x1164   :  { %1513 = vrot.lane.b32.xlu0 %v1507_v62, %s1957_s5  ;;  %v1510_v27 = vrot.slane %v1509_v14, 2 }
0x1168   :  { %1531 = vrot.lane.b32.xlu0 %v1530_v5, %s1957_s5 }
0x11d2   :  { %v1476_v8 = vpop.permute.xlu0 %1475 }
0x11d3   :  { %v1478_v12 = vadd.f32 %v1476_v8, %v2221_v17 }
0x11d5   :  { %1915 = vtanh.f32 %v1478_v12 }
0x11d6   :  { %1917 = vpow2.f32 %v1798_v9  ;;  %v1514_v23 = vpop.permute.xlu0 %1513 }
0x11d7   :  { %v1516_v28 = vadd.f32 %v1514_v23, %v1510_v27 }
0x11da   :  { %v1532_v17 = vpop.permute.xlu0 %1531 }
0x11db   :  { %v1534_v1 = vmul.f32 %v1912_v54, %v1532_v17  ;;  %v1674_v54 = vrot.slane %v2218_v15, 2 }
0x11e2   :  { %v1916_v21 = vpop.eup %1915 }
0x11e3   :  { %1520 = vrot.lane.b32.xlu1 %v1916_v21, %s1958_s7  ;;  %v1918_v6 = vpop.eup %1917 }
0x11e4   :  { %v1493_v25 = vadd.f32 1.0, %v1918_v6 }
0x11e6   :  { %1919 = vrcp.f32 %v1493_v25 }
0x11e7   :  { %1538 = vrot.lane.b32.xlu1 %v1530_v5, %s1958_s7  ;;  %1921 = vtanh.f32 %v1516_v28 }
0x11f3   :  { %v1920_v30 = vpop.eup %1919 }
0x11f4   :  { %v1922_v56 = vpop.eup %1921  ;;  %v1536_v46 = vsub.f32 1.0, %v1920_v30 }
0x11f6   :  { %v1537_v55 = vmul.f32 %v1922_v56, %v1536_v46 }
0x1255   :  { %v1521_v31 = vpop.permute.xlu1 %1520 }
0x1256   :  { %v1523_v33 = vmul.f32 %v1521_v31, %v1518_v29 }
0x1258   :  { %v1535_v22 = vadd.f32 %v1534_v1, %v1523_v33 }
0x1259   :  { %v1539_v59 = vpop.permute.xlu1 %1538 }
0x125a   :  { %v1541_v34 = vmul.f32 %v1920_v30, %v1539_v59  ;;  %v1550_v36 = vrot.slane %v1535_v22, %v2056_v19 }
0x125c   :  { %v1542_v37 = vadd.f32 %v1541_v34, %v1537_v55  ;;  %1551 = vrot.lane.b32.xlu0 %v1550_v36, %s1958_s7 }
0x125e   :  { %v1561_v40 = vrot.slane %v1542_v37, %v2056_v19 }
0x1260   :  { %1562 = vrot.lane.b32.xlu1 %v1561_v40, %s1957_s5 }
0x12ce   :  { %v1552_v43 = vpop.permute.xlu0 %1551 }
0x12cf   :  { %1799 = vst.msk [vmem:[%s2623_s6 + $0xc] sm:$0x3] %vm435_vm2, %v1552_v43 }
0x12d2   :  { %v1563_v63 = vpop.permute.xlu1 %1562 }
0x12d3   :  { %v1565_v47 = vsel %vm433_vm3, %v1552_v43, %v1563_v63  ;;  %1800 = vst.msk [vmem:[%s2623_s6 + $0x2] sm:$0x3] %vm438_vm4, %v1563_v63 }
0x12d4   :  { %1801 = vmatmul.mubr.msk.f32.vlgmr.msra.gmra.mxu0 %vm248_vm1, %v1565_v47  ;;  %v1717_v39 = vrot.slane %v1565_v47, %v2056_v19 }
0x1394   :  { %v1637_v48 = vpop.f32.mrf.mxu0 }
0x1395   :  { %v1638_v49 = vadd.f32 %v1637_v48, %v2191_v53 }
0x1396   :  { %v1639_v2 = vpop.f32.mrf.mxu0 }
0x1397   :  { %v1640_v3 = vadd.f32 %v1639_v2, %v2197_v57  ;;  %v1656_v4 = vrot.slane %v1638_v49, %v2056_v19  ;;  %v1642_v10 = vadd.f32 %v1638_v49, %v2225_v18  ;;  %v1667_v16 = vadd.f32 %v1638_v49, %v2218_v15 }
0x1399   :  { %v1690_v7 = vrot.slane %v1640_v3, %v2056_v19  ;;  %1657 = vrot.lane.b32.xlu0 %v1656_v4, %s1956_s3  ;;  %v1802_v13 = vmul.f32 -1.442695, %v1642_v10  ;;  %v1803_v53 = vmul.f32 -1.442695, %v1667_v16  ;;  %v1676_v45 = vadd.f32 %v1674_v54, %v1640_v3 }
0x139b   :  { %1691 = vrot.lane.b32.xlu1 %v1690_v7, %s1956_s3  ;;  %1923 = vpow2.f32 %v1802_v13  ;;  %v1804_v60 = vmul.f32 -1.442695, %v1676_v45 }
0x139c   :  { %1925 = vpow2.f32 %v1803_v53 }
0x139f   :  { %1695 = vrot.lane.b32.xlu1 %v2218_v15, %s1958_s7 }
0x13a8   :  { %v1924_v57 = vpop.eup %1923 }
0x13a9   :  { %v1646_v20 = vadd.f32 1.0, %v1924_v57  ;;  %v1926_v24 = vpop.eup %1925 }
0x13aa   :  { %v1671_v26 = vadd.f32 1.0, %v1926_v24 }
0x13ab   :  { %1927 = vrcp.f32 %v1646_v20 }
0x13ac   :  { %1929 = vrcp.f32 %v1671_v26 }
0x13b8   :  { %v1928_v32 = vpop.eup %1927 }
0x13b9   :  { %v1930_v42 = vpop.eup %1929  ;;  %v1705_v21 = vsub.f32 1.0, %v1928_v32 }
0x140b   :  { %v1658_v35 = vpop.permute.xlu0 %1657 }
0x140c   :  { %v1660_v38 = vmul.f32 %v1928_v32, %v1658_v35 }
0x140d   :  { %v1692_v41 = vpop.permute.xlu1 %1691 }
0x140e   :  { %1662 = vrot.lane.b32.xlu0 %v1660_v38, %s1956_s3  ;;  %v1694_v44 = vmul.f32 %v1930_v42, %v1692_v41 }
0x1411   :  { %v1696_v61 = vpop.permute.xlu1 %1695 }
0x1412   :  { %1700 = vrot.lane.b32.xlu0 %v1694_v44, %s1957_s5  ;;  %v1697_v8 = vrot.slane %v1696_v61, 2 }
0x1416   :  { %1718 = vrot.lane.b32.xlu0 %v1717_v39, %s1957_s5 }
0x1480   :  { %v1663_v50 = vpop.permute.xlu0 %1662 }
0x1481   :  { %v1665_v51 = vadd.f32 %v1663_v50, %v2225_v18 }
0x1483   :  { %1931 = vtanh.f32 %v1665_v51 }
0x1484   :  { %1933 = vpow2.f32 %v1804_v60  ;;  %v1701_v62 = vpop.permute.xlu0 %1700 }
0x1485   :  { %v1703_v12 = vadd.f32 %v1701_v62, %v1697_v8 }
0x1488   :  { %v1719_v18 = vpop.permute.xlu0 %1718 }
0x1489   :  { %v1721_v9 = vmul.f32 %v1928_v32, %v1719_v18 }
0x1490   :  { %v1932_v52 = vpop.eup %1931 }
0x1491   :  { %1707 = vrot.lane.b32.xlu1 %v1932_v52, %s1958_s7  ;;  %v1934_v58 = vpop.eup %1933 }
0x1492   :  { %v1680_v5 = vadd.f32 1.0, %v1934_v58 }
0x1494   :  { %1935 = vrcp.f32 %v1680_v5 }
0x1495   :  { %1725 = vrot.lane.b32.xlu1 %v1717_v39, %s1958_s7  ;;  %1937 = vtanh.f32 %v1703_v12 }
0x14a1   :  { %v1936_v11 = vpop.eup %1935 }
0x14a2   :  { %v1938_v14 = vpop.eup %1937  ;;  %v1723_v15 = vsub.f32 1.0, %v1936_v11 }
0x14a4   :  { %v1724_v27 = vmul.f32 %v1938_v14, %v1723_v15 }
0x1503   :  { %v1708_v0 = vpop.permute.xlu1 %1707 }
0x1504   :  { %v1710_v6 = vmul.f32 %v1708_v0, %v1705_v21 }
0x1506   :  { %v1722_v23 = vadd.f32 %v1721_v9, %v1710_v6 }
0x1507   :  { %v1726_v25 = vpop.permute.xlu1 %1725 }
0x1508   :  { %v1728_v28 = vmul.f32 %v1936_v11, %v1726_v25  ;;  %v1737_v17 = vrot.slane %v1722_v23, %v2056_v19 }
0x150a   :  { %v1729_v29 = vadd.f32 %v1728_v28, %v1724_v27  ;;  %1738 = vrot.lane.b32.xlu0 %v1737_v17, %s1958_s7 }
0x150c   :  { %v1749_v30 = vrot.slane %v1729_v29, %v2056_v19 }
0x150e   :  { %1750 = vrot.lane.b32.xlu1 %v1749_v30, %s1957_s5 }
0x157c   :  { %v1739_v31 = vpop.permute.xlu0 %1738 }
0x157d   :  { %1805 = vst.msk [vmem:[%s2623_s6 + $0xe] sm:$0x3] %vm435_vm2, %v1739_v31 }
0x1580   :  { %v1751_v1 = vpop.permute.xlu1 %1750 }
0x1581   :  { %1753 = vst.msk [vmem:[%s2623_s6] sm:$0x3] %vm438_vm4, %v1751_v1 }

</bundles_post_ra>
